<compile_context>
chip_gen: v6e
topology: v6e:2x2x1
jax: 0.10.0
libtpu: 0.0.40
codegen_flags: <defaults>
</compile_context>

<pallas_src>
import functools
import math

import jax
import jax.numpy as jnp
from jax.experimental import pallas as pl
from jax.experimental.pallas import tpu as pltpu


_EPS = 1e-5                       # cs336 Rmsnorm default. TODO(synk): confirm.
_VMEM_LIMIT = 48 * 1024 * 1024    # > v5e's 16 MiB default, < v7x's 64 MiB phys


# --------------------------- small helpers -----------------------------------

def _tile(dim, desired):
    """Pick `desired` if it evenly divides `dim`, else fall back to the full
    dim (always layout-legal)."""
    return desired if (dim >= desired and dim % desired == 0) else dim


def _cparams(*sem):
    return pltpu.CompilerParams(dimension_semantics=sem,
                                vmem_limit_bytes=_VMEM_LIMIT)


# ----------------------------- Pallas kernels ---------------------------------

def _norm_matmul_kernel(x_ref, g_ref, w_ref, o_ref, xn_sc, *, eps):
    """o = rmsnorm(x) @ W  (W pre-transposed (D, N), bf16; f32 accumulate).

    The normalized activation is cached in a bf16 VMEM scratch at j == 0 and
    reused across the N grid axis (no per-vocab-tile mean/rsqrt/cast).
    """
    @pl.when(pl.program_id(1) == 0)
    def _():
        x = x_ref[...]                                       # (tm, D) f32
        ms = jnp.mean(x * x, axis=-1, keepdims=True)
        xn_sc[...] = ((x * jax.lax.rsqrt(ms + eps)) * g_ref[...]).astype(xn_sc.dtype)

    o_ref[...] = jnp.dot(xn_sc[...], w_ref[...],
                         preferred_element_type=jnp.float32).astype(o_ref.dtype)


def _matmul_res_kernel(a_ref, w_ref, r_ref, o_ref):
    """o = r + a @ W   (fused residual add; `a` arrives in bf16)."""
    o_ref[...] = r_ref[...] + jnp.dot(a_ref[...].astype(w_ref.dtype), w_ref[...],
                                      preferred_element_type=jnp.float32)


def _norm_swiglu_res_kernel(x_ref, g_ref, w1_ref, w3_ref, w2_ref, o_ref,
                            xn_sc, acc_sc, *, eps):
    """o = x + SwiGLU(rmsnorm(x)), with d_ff tiled along an 'arbitrary' axis.

    Only (D, tf) / (tf, D) weight slices are resident; the down-projection is
    accumulated in a (tm, D) f32 scratch seeded with the residual.
    """
    f = pl.program_id(1)

    @pl.when(f == 0)
    def _():
        x = x_ref[...]                                       # (tm, D) f32
        ms = jnp.mean(x * x, axis=-1, keepdims=True)
        xn_sc[...] = ((x * jax.lax.rsqrt(ms + eps)) * g_ref[...]).astype(xn_sc.dtype)
        acc_sc[...] = x                                      # residual seed

    xn = xn_sc[...]
    a = jnp.dot(xn, w1_ref[...], preferred_element_type=jnp.float32)
    b = jnp.dot(xn, w3_ref[...], preferred_element_type=jnp.float32)
    h = ((a * jax.nn.sigmoid(a)) * b).astype(w2_ref.dtype)   # SiLU(a) * b
    acc_sc[...] += jnp.dot(h, w2_ref[...], preferred_element_type=jnp.float32)

    @pl.when(f == pl.num_programs(1) - 1)
    def _():
        o_ref[...] = acc_sc[...]


def _rope_kernel(x_ref, c_ref, s_ref, perm_ref, o_ref):
    """One-pass interleaved-pair RoPE: rot(x) = x*cos + (x @ P)*sin_signed.

    Hoisted out of the attention inner loop (previously recomputed per KV
    tile); the permutation matmul now runs once per q/k element.
    """
    x = x_ref[0].astype(jnp.float32)                         # (ts, Dh)
    rot = x * c_ref[...] + jnp.dot(
        x, perm_ref[...], preferred_element_type=jnp.float32) * s_ref[...]
    o_ref[0] = rot.astype(o_ref.dtype)


def _flash_attn_kernel(q_ref, k_ref, v_ref, o_ref, m_sc, l_sc, acc_sc, *, tq, tk):
    """Flash-style causal attention; RoPE and 1/sqrt(Dh) already folded into q/k.

    Causal mask only on the diagonal tile; above-diagonal tiles skip compute
    entirely (and their KV DMA is suppressed by the clamped index_map).
    """
    qi = pl.program_id(1)
    ki = pl.program_id(2)

    @pl.when(ki == 0)
    def _init():
        m_sc[...] = jnp.full(m_sc.shape, -jnp.inf, jnp.float32)
        l_sc[...] = jnp.zeros(l_sc.shape, jnp.float32)
        acc_sc[...] = jnp.zeros(acc_sc.shape, jnp.float32)

    def _scores():
        return jax.lax.dot_general(                          # q @ k^T (NT), bf16 MXU
            q_ref[0], k_ref[0], (((1,), (1,)), ((), ())),
            preferred_element_type=jnp.float32)

    def _update(s):
        m_prev = m_sc[...]                                   # (tq, 1)
        m_new = jnp.maximum(m_prev, jnp.max(s, axis=-1, keepdims=True))
        alpha = jnp.exp(m_prev - m_new)
        p = jnp.exp(s - m_new)
        l_sc[...] = alpha * l_sc[...] + jnp.sum(p, axis=-1, keepdims=True)
        acc_sc[...] = alpha * acc_sc[...] + jnp.dot(
            p.astype(jnp.bfloat16), v_ref[0],
            preferred_element_type=jnp.float32)
        m_sc[...] = m_new

    @pl.when(ki < qi)            # fully below the diagonal: no mask needed
    def _interior():
        _update(_scores())

    @pl.when(ki == qi)           # diagonal tile (tq == tk, self-aligned)
    def _diag():
        s = _scores()
        row = jax.lax.broadcasted_iota(jnp.int32, (tq, tk), 0)
        col = jax.lax.broadcasted_iota(jnp.int32, (tq, tk), 1)
        _update(jnp.where(col <= row, s, -1e30))

    @pl.when(ki == pl.num_programs(2) - 1)
    def _finalize():
        o_ref[0] = (acc_sc[...] *
                    pl.reciprocal(l_sc[...], approx=True)).astype(o_ref.dtype)


# ------------------------------ wrappers ---------------------------------------

def norm_matmul(x2d, gain, w_t, *, tm=256, tn=512, out_dtype=jnp.float32):
    """rmsnorm(x) @ W, tiled over (M, N); W is (D, N) bf16 pre-transposed."""
    M, D = x2d.shape
    N = w_t.shape[1]
    tm = _tile(M, tm)
    tn = _tile(N, tn)
    return pl.pallas_call(
        functools.partial(_norm_matmul_kernel, eps=_EPS),
        out_shape=jax.ShapeDtypeStruct((M, N), out_dtype),
        grid=(M // tm, N // tn),
        in_specs=[pl.BlockSpec((tm, D), lambda i, j: (i, 0)),
                  pl.BlockSpec((1, D), lambda i, j: (0, 0)),
                  pl.BlockSpec((D, tn), lambda i, j: (0, j))],
        out_specs=pl.BlockSpec((tm, tn), lambda i, j: (i, j)),
        scratch_shapes=[pltpu.VMEM((tm, D), jnp.bfloat16)],
        # N axis is 'arbitrary' so the cached xn scratch is never split
        # across TensorCores.
        compiler_params=_cparams("parallel", "arbitrary"),
    )(x2d, gain.reshape(1, D), w_t)


def matmul_residual(a2d, w_t, r2d, *, tm=256, tn=256):
    """r + a @ W, tiled over (M, N); full-K (= d_model) blocks, `a` in bf16."""
    M, K = a2d.shape
    N = w_t.shape[1]
    tm = _tile(M, tm)
    tn = _tile(N, tn)
    return pl.pallas_call(
        _matmul_res_kernel,
        out_shape=jax.ShapeDtypeStruct((M, N), jnp.float32),
        grid=(M // tm, N // tn),
        in_specs=[pl.BlockSpec((tm, K), lambda i, j: (i, 0)),
                  pl.BlockSpec((K, tn), lambda i, j: (0, j)),
                  pl.BlockSpec((tm, tn), lambda i, j: (i, j))],
        out_specs=pl.BlockSpec((tm, tn), lambda i, j: (i, j)),
        compiler_params=_cparams("parallel", "parallel"),
    )(a2d, w_t, r2d)


def norm_swiglu_residual(x2d, gain, w1_t, w3_t, w2_t, *, tm=256, tf=512):
    """x + SwiGLU(rmsnorm(x)), tiled over (M, F); weights never fully resident."""
    M, D = x2d.shape
    F = w1_t.shape[1]
    tm = _tile(M, tm)
    tf = _tile(F, tf)
    return pl.pallas_call(
        functools.partial(_norm_swiglu_res_kernel, eps=_EPS),
        out_shape=jax.ShapeDtypeStruct((M, D), jnp.float32),
        grid=(M // tm, F // tf),
        in_specs=[pl.BlockSpec((tm, D), lambda i, f: (i, 0)),
                  pl.BlockSpec((1, D), lambda i, f: (0, 0)),
                  pl.BlockSpec((D, tf), lambda i, f: (0, f)),
                  pl.BlockSpec((D, tf), lambda i, f: (0, f)),
                  pl.BlockSpec((tf, D), lambda i, f: (f, 0))],
        out_specs=pl.BlockSpec((tm, D), lambda i, f: (i, 0)),
        scratch_shapes=[pltpu.VMEM((tm, D), jnp.bfloat16),   # cached rmsnorm(x)
                        pltpu.VMEM((tm, D), jnp.float32)],   # residual + down-proj acc
        compiler_params=_cparams("parallel", "arbitrary"),
    )(x2d, gain.reshape(1, D), w1_t, w3_t, w2_t)


def apply_rope(x, cos, sin_signed, perm, *, ts=256):
    """x: (B*H, S, Dh) -> RoPE(x) in bf16 (single pass over q or k)."""
    BH, S, Dh = x.shape
    ts = _tile(S, ts)
    return pl.pallas_call(
        _rope_kernel,
        out_shape=jax.ShapeDtypeStruct((BH, S, Dh), jnp.bfloat16),
        grid=(BH, S // ts),
        in_specs=[pl.BlockSpec((1, ts, Dh), lambda b, i: (b, i, 0)),
                  pl.BlockSpec((ts, Dh), lambda b, i: (i, 0)),
                  pl.BlockSpec((ts, Dh), lambda b, i: (i, 0)),
                  pl.BlockSpec((Dh, Dh), lambda b, i: (0, 0))],
        out_specs=pl.BlockSpec((1, ts, Dh), lambda b, i: (b, i, 0)),
        compiler_params=_cparams("parallel", "parallel"),
    )(x, cos, sin_signed, perm)


def flash_causal_attention(q, k, v, *, tq=256):
    """q, k, v: (B*H, S, Dh) bf16; q pre-scaled by 1/sqrt(Dh), RoPE applied."""
    BH, S, Dh = q.shape
    tq = _tile(S, tq)
    tk = tq                     # equal tiles => diagonal tile is self-aligned
    nq, nk = S // tq, S // tk

    qspec = pl.BlockSpec((1, tq, Dh), lambda b, i, j: (b, i, 0))
    # Clamp the KV block index so above-diagonal steps revisit the resident
    # block -> no DMA is issued for masked tiles.
    kvspec = pl.BlockSpec((1, tk, Dh), lambda b, i, j: (b, jnp.minimum(i, j), 0))
    # TODO(synk): a triangular 1-D grid (PrefetchScalarGridSpec) would also
    # drop the per-step overhead of the skipped steps.
    # TODO(synk): for head_dim < 128, grouping 128/Dh heads per block would
    # make the lane dimension dense; left as-is (Dh is the full last dim).

    return pl.pallas_call(
        functools.partial(_flash_attn_kernel, tq=tq, tk=tk),
        out_shape=jax.ShapeDtypeStruct((BH, S, Dh), jnp.bfloat16),
        grid=(BH, nq, nk),
        in_specs=[qspec, kvspec, kvspec],
        out_specs=qspec,
        scratch_shapes=[pltpu.VMEM((tq, 1), jnp.float32),    # running max m
                        pltpu.VMEM((tq, 1), jnp.float32),    # running sum l
                        pltpu.VMEM((tq, Dh), jnp.float32)],  # output accumulator
        compiler_params=_cparams("parallel", "parallel", "arbitrary"),
    )(q, k, v)


# ------------------------------- JAX glue --------------------------------------

def rope_tables(seq_len, head_dim, theta):
    """Interleaved-pair RoPE tables + pair-swap permutation matrix."""
    half = head_dim // 2
    inv_freq = theta ** (-(jnp.arange(half, dtype=jnp.float32) * 2.0) / head_dim)
    ang = jnp.arange(seq_len, dtype=jnp.float32)[:, None] * inv_freq[None, :]
    cos = jnp.repeat(jnp.cos(ang), 2, axis=-1)                      # (S, Dh)
    sin = jnp.repeat(jnp.sin(ang), 2, axis=-1)                      # (S, Dh)
    sign = jnp.tile(jnp.array([-1.0, 1.0], jnp.float32), half)      # (Dh,)
    sin_signed = sin * sign[None, :]
    # perm: (x @ perm)[:, 2i] = x[:, 2i+1], (x @ perm)[:, 2i+1] = x[:, 2i]
    eye = jnp.eye(head_dim, dtype=jnp.float32)
    perm = eye.reshape(half, 2, head_dim)[:, ::-1, :].reshape(head_dim, head_dim)
    return cos, sin_signed, perm


def mhsa_block(x, p, num_heads, rope):
    """x + W_o( attention( RoPE(q)/sqrt(Dh), RoPE(k), v ) ), norm1 fused in."""
    cos, sin_signed, perm = rope
    B, S, D = x.shape
    Dh = D // num_heads
    x2 = x.reshape(B * S, D)

    # Fused rmsnorm + concatenated QKV projection, emitted directly in bf16.
    qkv = norm_matmul(x2, p["norm1"], p["wqkv_t"], out_dtype=jnp.bfloat16)
    # TODO(synk): head split/merge transposes are left to XLA; per-head column
    # BlockSpecs would need Dh-wide (<128) lane blocks (lane-sparse).
    qkv = qkv.reshape(B, S, 3, num_heads, Dh).transpose(2, 0, 3, 1, 4)
    q = qkv[0].reshape(B * num_heads, S, Dh)
    k = qkv[1].reshape(B * num_heads, S, Dh)
    v = qkv[2].reshape(B * num_heads, S, Dh)

    # RoPE pre-pass (hoisted out of the attention inner loop); the 1/sqrt(Dh)
    # score scale is folded into the q-side tables.
    scale = 1.0 / math.sqrt(Dh)
    q = apply_rope(q, cos * scale, sin_signed * scale, perm)
    k = apply_rope(k, cos, sin_signed, perm)

    o = flash_causal_attention(q, k, v)                      # (B*H, S, Dh) bf16
    o = o.reshape(B, num_heads, S, Dh).transpose(0, 2, 1, 3).reshape(B * S, D)

    # Output projection with fused residual add (residual stays f32).
    return matmul_residual(o, p["wo_t"], x2).reshape(B, S, D)


def transformer_block(x, p, num_heads, rope):
    B, S, D = x.shape
    x = mhsa_block(x, p, num_heads, rope)
    x2 = norm_swiglu_residual(x.reshape(B * S, D), p["norm2"],
                              p["w1_t"], p["w3_t"], p["w2_t"])
    return x2.reshape(B, S, D)


def xformer_lm_forward(params, in_indices, num_heads, rope_theta):
    # TODO(synk): embedding gather is data-dependent; kept in plain JAX.
    x = jnp.take(params["emb"], in_indices, axis=0)                 # (B, S, D)
    B, S, D = x.shape
    rope = rope_tables(S, D // num_heads, rope_theta)
    for p in params["blocks"]:
        x = transformer_block(x, p, num_heads, rope)
    # Fused final rmsnorm + lm_head, vocab-tiled with lane-dense output.
    logits = norm_matmul(x.reshape(B * S, D), params["final_norm"],
                         params["lm_head_t"], tn=512)
    return logits.reshape(B, S, -1)


# ------------------------------- parameters ------------------------------------

def init_params(key, vocab_size, d_model, num_layers, d_ff):
    """torch.nn.Linear layout: (out_features, in_features), f32."""
    def nrm(k, shape, std=0.02):
        return jax.random.normal(k, shape, dtype=jnp.float32) * std

    keys = jax.random.split(key, 2 + num_layers)
    params = {
        "emb": nrm(keys[0], (vocab_size, d_model)),
        "final_norm": jnp.ones((d_model,), jnp.float32),
        "lm_head": nrm(keys[1], (vocab_size, d_model)),
        "blocks": [],
    }
    for l in range(num_layers):
        ks = jax.random.split(keys[2 + l], 7)
        params["blocks"].append({
            "norm1": jnp.ones((d_model,), jnp.float32),
            "norm2": jnp.ones((d_model,), jnp.float32),
            "wq": nrm(ks[0], (d_model, d_model)),
            "wk": nrm(ks[1], (d_model, d_model)),
            "wv": nrm(ks[2], (d_model, d_model)),
            "wo": nrm(ks[3], (d_model, d_model)),
            "w1": nrm(ks[4], (d_ff, d_model)),
            "w3": nrm(ks[5], (d_ff, d_model)),
            "w2": nrm(ks[6], (d_model, d_ff)),
        })
    return params


def prepare_params(raw):
    """Pre-transpose Linear weights to (in, out) and cast to bf16 once."""
    bf = jnp.bfloat16
    out = {
        "emb": raw["emb"],
        "final_norm": raw["final_norm"],
        "lm_head_t": raw["lm_head"].T.astype(bf),
        "blocks": [],
    }
    for b in raw["blocks"]:
        out["blocks"].append({
            "norm1": b["norm1"],
            "norm2": b["norm2"],
            "wqkv_t": jnp.concatenate([b["wq"], b["wk"], b["wv"]],
                                      axis=0).T.astype(bf),          # (D, 3D)
            "wo_t": b["wo"].T.astype(bf),                            # (D, D)
            "w1_t": b["w1"].T.astype(bf),                            # (D, F)
            "w3_t": b["w3"].T.astype(bf),                            # (D, F)
            "w2_t": b["w2"].T.astype(bf),                            # (F, D)
        })
    return out


# ---------------------------------- main ----------------------------------------

if __name__ == "__main__":
    vocab_size = 64
    context_length = 16
    d_model = 32
    num_layers = 2
    num_heads = 4
    d_ff = 64
    rope_theta = 10000.0
    batch, seq = 2, 8

    root = jax.random.PRNGKey(0)
    k_params, k_ids = jax.random.split(root)
    params = prepare_params(init_params(k_params, vocab_size, d_model,
                                        num_layers, d_ff))
    in_indices = jax.random.randint(k_ids, (batch, seq), 0, vocab_size,
                                    dtype=jnp.int32)

    fwd = jax.jit(functools.partial(xformer_lm_forward,
                                    num_heads=num_heads,
                                    rope_theta=rope_theta))
    logits = fwd(params, in_indices)
    logits = jax.block_until_ready(logits)

    assert logits.shape == (batch, seq, vocab_size)
    assert logits.dtype == jnp.float32
    assert bool(jnp.all(jnp.isfinite(logits)))
    print("KERNEL_OK")
</pallas_src>

<mosaic_0001>
module attributes {stable_mosaic.version = 11 : i64} {
  func.func @_rope_kernel(%arg0: i32, %arg1: i32, %arg2: memref<1x8x8xbf16, #tpu.memory_space<vmem>>, %arg3: memref<8x8xf32, #tpu.memory_space<vmem>>, %arg4: memref<8x8xf32, #tpu.memory_space<vmem>>, %arg5: memref<8x8xf32, #tpu.memory_space<vmem>>, %arg6: memref<1x8x8xbf16, #tpu.memory_space<vmem>>) attributes {dimension_semantics = [#tpu.dimension_semantics<parallel>, #tpu.dimension_semantics<parallel>], iteration_bounds = array<i64: 8, 1>, scalar_prefetch = 0 : i64, scratch_operands = 0 : i64, tpu.core_type = #tpu.core_type<tc>, window_params = [{transform_indices = @transform_0, window_bounds = array<i64: 1, 8, 8>}, {transform_indices = @transform_1, window_bounds = array<i64: 8, 8>}, {transform_indices = @transform_2, window_bounds = array<i64: 8, 8>}, {pipeline_mode = #tpu.pipeline_mode<synchronous>, transform_indices = @transform_3, window_bounds = array<i64: 8, 8>}, {transform_indices = @transform_4, window_bounds = array<i64: 1, 8, 8>}]} {
    %c0 = arith.constant 0 : index
    %c0_0 = arith.constant 0 : index
    %c0_1 = arith.constant 0 : index
    %0 = vector.load %arg2[%c0, %c0_0, %c0_1] : memref<1x8x8xbf16, #tpu.memory_space<vmem>>, vector<1x8x8xbf16>
    %1 = vector.shape_cast %0 : vector<1x8x8xbf16> to vector<8x8xbf16>
    %2 = arith.extf %1 : vector<8x8xbf16> to vector<8x8xf32>
    %c0_2 = arith.constant 0 : index
    %c0_3 = arith.constant 0 : index
    %3 = vector.load %arg3[%c0_2, %c0_3] : memref<8x8xf32, #tpu.memory_space<vmem>>, vector<8x8xf32>
    %4 = arith.mulf %2, %3 : vector<8x8xf32>
    %c0_4 = arith.constant 0 : index
    %c0_5 = arith.constant 0 : index
    %5 = vector.load %arg5[%c0_4, %c0_5] : memref<8x8xf32, #tpu.memory_space<vmem>>, vector<8x8xf32>
    %cst = arith.constant dense<0.000000e+00> : vector<8x8xf32>
    %6 = tpu.matmul %2, %5, %cst {dimension_numbers = #tpu.dot_dimension_numbers<[1], [0], [0], [1], [0, 0, 1, 1], [], []>} : vector<8x8xf32>, vector<8x8xf32>, vector<8x8xf32> -> vector<8x8xf32>
    %c0_6 = arith.constant 0 : index
    %c0_7 = arith.constant 0 : index
    %7 = vector.load %arg4[%c0_6, %c0_7] : memref<8x8xf32, #tpu.memory_space<vmem>>, vector<8x8xf32>
    %8 = arith.mulf %6, %7 : vector<8x8xf32>
    %9 = arith.addf %4, %8 : vector<8x8xf32>
    %10 = arith.truncf %9 : vector<8x8xf32> to vector<8x8xbf16>
    %c0_8 = arith.constant 0 : index
    %c0_9 = arith.constant 0 : index
    %c0_10 = arith.constant 0 : index
    %11 = vector.load %arg6[%c0_8, %c0_9, %c0_10] : memref<1x8x8xbf16, #tpu.memory_space<vmem>>, vector<1x8x8xbf16>
    %12 = vector.shape_cast %11 : vector<1x8x8xbf16> to vector<8x8xbf16>
    %13 = vector.shape_cast %10 : vector<8x8xbf16> to vector<1x8x8xbf16>
    tpu.vector_store %arg6[%c0_8, %c0_9, %c0_10], %13 {strides = array<i32>} : memref<1x8x8xbf16, #tpu.memory_space<vmem>>, vector<1x8x8xbf16>,
    return
  }
  func.func @transform_0(%arg0: i32, %arg1: i32) -> (i32, i32, i32) {
    %c0_i32 = arith.constant 0 : i32
    %c0_i32_0 = arith.constant 0 : i32
    return %arg0, %arg1, %c0_i32 : i32, i32, i32
  }
  func.func @transform_1(%arg0: i32, %arg1: i32) -> (i32, i32) {
    %c0_i32 = arith.constant 0 : i32
    %c0_i32_0 = arith.constant 0 : i32
    return %arg1, %c0_i32 : i32, i32
  }
  func.func @transform_2(%arg0: i32, %arg1: i32) -> (i32, i32) {
    %c0_i32 = arith.constant 0 : i32
    %c0_i32_0 = arith.constant 0 : i32
    return %arg1, %c0_i32 : i32, i32
  }
  func.func @transform_3(%arg0: i32, %arg1: i32) -> (i32, i32) {
    %c0_i32 = arith.constant 0 : i32
    %c0_i32_0 = arith.constant 0 : i32
    %c0_i32_1 = arith.constant 0 : i32
    return %c0_i32, %c0_i32_0 : i32, i32
  }
  func.func @transform_4(%arg0: i32, %arg1: i32) -> (i32, i32, i32) {
    %c0_i32 = arith.constant 0 : i32
    %c0_i32_0 = arith.constant 0 : i32
    return %arg0, %arg1, %c0_i32 : i32, i32, i32
  }
}

module attributes {stable_mosaic.version = 11 : i64} {
  func.func @_norm_matmul_kernel(%arg0: i32, %arg1: i32, %arg2: memref<16x32xf32, #tpu.memory_space<vmem>>, %arg3: memref<1x32xf32, #tpu.memory_space<vmem>>, %arg4: memref<32x96xbf16, #tpu.memory_space<vmem>>, %arg5: memref<16x96xbf16, #tpu.memory_space<vmem>>, %arg6: memref<16x32xbf16, #tpu.memory_space<vmem>>) attributes {dimension_semantics = [#tpu.dimension_semantics<parallel>, #tpu.dimension_semantics<arbitrary>], iteration_bounds = array<i64: 1, 1>, scalar_prefetch = 0 : i64, scratch_operands = 1 : i64, tpu.core_type = #tpu.core_type<tc>, window_params = [{transform_indices = @transform_0, window_bounds = array<i64: 16, 32>}, {pipeline_mode = #tpu.pipeline_mode<synchronous>, transform_indices = @transform_1, window_bounds = array<i64: 1, 32>}, {transform_indices = @transform_2, window_bounds = array<i64: 32, 96>}, {transform_indices = @transform_3, window_bounds = array<i64: 16, 96>}]} {
    %c0_i32 = arith.constant 0 : i32
    %0 = arith.cmpi eq, %arg1, %c0_i32 : i32
    %1 = arith.extui %0 : i1 to i32
    %c0_i32_0 = arith.constant 0 : i32
    %2 = arith.cmpi ne, %1, %c0_i32_0 : i32
    scf.if %2 {
      %c0_6 = arith.constant 0 : index
      %c0_7 = arith.constant 0 : index
      %8 = vector.load %arg2[%c0_6, %c0_7] : memref<16x32xf32, #tpu.memory_space<vmem>>, vector<16x32xf32>
      %9 = arith.mulf %8, %8 : vector<16x32xf32>
      %cst_8 = arith.constant dense<0.000000e+00> : vector<16xf32>
      %10 = vector.multi_reduction <add>, %9, %cst_8 [1] : vector<16x32xf32> to vector<16xf32>
      %11 = vector.shape_cast %10 : vector<16xf32> to vector<16x1xf32>
      %cst_9 = arith.constant 3.200000e+01 : f32
      %12 = vector.broadcast %cst_9 : f32 to vector<16x1xf32>
      %13 = arith.divf %11, %12 : vector<16x1xf32>
      %cst_10 = arith.constant 9.99999974E-6 : f32
      %14 = vector.broadcast %cst_10 : f32 to vector<16x1xf32>
      %15 = arith.addf %13, %14 : vector<16x1xf32>
      %16 = math.rsqrt %15 : vector<16x1xf32>
      %17 = vector.broadcast %16 : vector<16x1xf32> to vector<16x32xf32>
      %18 = arith.mulf %8, %17 : vector<16x32xf32>
      %c0_11 = arith.constant 0 : index
      %c0_12 = arith.constant 0 : index
      %19 = vector.load %arg3[%c0_11, %c0_12] : memref<1x32xf32, #tpu.memory_space<vmem>>, vector<1x32xf32>
      %20 = vector.broadcast %19 : vector<1x32xf32> to vector<16x32xf32>
      %21 = arith.mulf %18, %20 : vector<16x32xf32>
      %22 = arith.truncf %21 : vector<16x32xf32> to vector<16x32xbf16>
      %c0_13 = arith.constant 0 : index
      %c0_14 = arith.constant 0 : index
      %23 = vector.load %arg6[%c0_13, %c0_14] : memref<16x32xbf16, #tpu.memory_space<vmem>>, vector<16x32xbf16>
      tpu.vector_store %arg6[%c0_13, %c0_14], %22 {strides = array<i32>} : memref<16x32xbf16, #tpu.memory_space<vmem>>, vector<16x32xbf16>,
    } else {
    }
    %c0 = arith.constant 0 : index
    %c0_1 = arith.constant 0 : index
    %3 = vector.load %arg6[%c0, %c0_1] : memref<16x32xbf16, #tpu.memory_space<vmem>>, vector<16x32xbf16>
    %c0_2 = arith.constant 0 : index
    %c0_3 = arith.constant 0 : index
    %4 = vector.load %arg4[%c0_2, %c0_3] : memref<32x96xbf16, #tpu.memory_space<vmem>>, vector<32x96xbf16>
    %cst = arith.constant dense<0.000000e+00> : vector<16x96xf32>
    %5 = tpu.matmul %3, %4, %cst {dimension_numbers = #tpu.dot_dimension_numbers<[1], [0], [0], [1], [0, 0, 1, 1], [], []>} : vector<16x32xbf16>, vector<32x96xbf16>, vector<16x96xf32> -> vector<16x96xf32>
    %6 = arith.truncf %5 : vector<16x96xf32> to vector<16x96xbf16>
    %c0_4 = arith.constant 0 : index
    %c0_5 = arith.constant 0 : index
    %7 = vector.load %arg5[%c0_4, %c0_5] : memref<16x96xbf16, #tpu.memory_space<vmem>>, vector<16x96xbf16>
    tpu.vector_store %arg5[%c0_4, %c0_5], %6 {strides = array<i32>} : memref<16x96xbf16, #tpu.memory_space<vmem>>, vector<16x96xbf16>,
    return
  }
  func.func @transform_0(%arg0: i32, %arg1: i32) -> (i32, i32) {
    %c0_i32 = arith.constant 0 : i32
    %c0_i32_0 = arith.constant 0 : i32
    return %arg0, %c0_i32 : i32, i32
  }
  func.func @transform_1(%arg0: i32, %arg1: i32) -> (i32, i32) {
    %c0_i32 = arith.constant 0 : i32
    %c0_i32_0 = arith.constant 0 : i32
    %c0_i32_1 = arith.constant 0 : i32
    return %c0_i32, %c0_i32_0 : i32, i32
  }
  func.func @transform_2(%arg0: i32, %arg1: i32) -> (i32, i32) {
    %c0_i32 = arith.constant 0 : i32
    %c0_i32_0 = arith.constant 0 : i32
    return %c0_i32, %arg1 : i32, i32
  }
  func.func @transform_3(%arg0: i32, %arg1: i32) -> (i32, i32) {
    %c0_i32 = arith.constant 0 : i32
    return %arg0, %arg1 : i32, i32
  }
}

module attributes {stable_mosaic.version = 11 : i64} {
  func.func @_flash_attn_kernel(%arg0: i32, %arg1: i32, %arg2: i32, %arg3: memref<1x8x8xbf16, #tpu.memory_space<vmem>>, %arg4: memref<1x8x8xbf16, #tpu.memory_space<vmem>>, %arg5: memref<1x8x8xbf16, #tpu.memory_space<vmem>>, %arg6: memref<1x8x8xbf16, #tpu.memory_space<vmem>>, %arg7: memref<8x1xf32, #tpu.memory_space<vmem>>, %arg8: memref<8x1xf32, #tpu.memory_space<vmem>>, %arg9: memref<8x8xf32, #tpu.memory_space<vmem>>) attributes {dimension_semantics = [#tpu.dimension_semantics<parallel>, #tpu.dimension_semantics<parallel>, #tpu.dimension_semantics<arbitrary>], iteration_bounds = array<i64: 8, 1, 1>, scalar_prefetch = 0 : i64, scratch_operands = 3 : i64, tpu.core_type = #tpu.core_type<tc>, window_params = [{transform_indices = @transform_0, window_bounds = array<i64: 1, 8, 8>}, {transform_indices = @transform_1, window_bounds = array<i64: 1, 8, 8>}, {transform_indices = @transform_2, window_bounds = array<i64: 1, 8, 8>}, {transform_indices = @transform_3, window_bounds = array<i64: 1, 8, 8>}]} {
    %c0_i32 = arith.constant 0 : i32
    %0 = arith.cmpi eq, %arg2, %c0_i32 : i32
    %1 = arith.extui %0 : i1 to i32
    %c0_i32_0 = arith.constant 0 : i32
    %2 = arith.cmpi ne, %1, %c0_i32_0 : i32
    scf.if %2 {
      %cst = arith.constant 0xFF800000 : f32
      %12 = vector.broadcast %cst : f32 to vector<8x1xf32>
      %c0 = arith.constant 0 : index
      %c0_5 = arith.constant 0 : index
      %13 = vector.load %arg7[%c0, %c0_5] : memref<8x1xf32, #tpu.memory_space<vmem>>, vector<8x1xf32>
      tpu.vector_store %arg7[%c0, %c0_5], %12 {strides = array<i32>} : memref<8x1xf32, #tpu.memory_space<vmem>>, vector<8x1xf32>,
      %cst_6 = arith.constant 0.000000e+00 : f32
      %14 = vector.broadcast %cst_6 : f32 to vector<8x1xf32>
      %c0_7 = arith.constant 0 : index
      %c0_8 = arith.constant 0 : index
      %15 = vector.load %arg8[%c0_7, %c0_8] : memref<8x1xf32, #tpu.memory_space<vmem>>, vector<8x1xf32>
      tpu.vector_store %arg8[%c0_7, %c0_8], %14 {strides = array<i32>} : memref<8x1xf32, #tpu.memory_space<vmem>>, vector<8x1xf32>,
      %cst_9 = arith.constant 0.000000e+00 : f32
      %16 = vector.broadcast %cst_9 : f32 to vector<8x8xf32>
      %c0_10 = arith.constant 0 : index
      %c0_11 = arith.constant 0 : index
      %17 = vector.load %arg9[%c0_10, %c0_11] : memref<8x8xf32, #tpu.memory_space<vmem>>, vector<8x8xf32>
      tpu.vector_store %arg9[%c0_10, %c0_11], %16 {strides = array<i32>} : memref<8x8xf32, #tpu.memory_space<vmem>>, vector<8x8xf32>,
    } else {
    }
    %3 = arith.cmpi slt, %arg2, %arg1 : i32
    %4 = arith.extui %3 : i1 to i32
    %c0_i32_1 = arith.constant 0 : i32
    %5 = arith.cmpi ne, %4, %c0_i32_1 : i32
    scf.if %5 {
      %c0 = arith.constant 0 : index
      %c0_5 = arith.constant 0 : index
      %c0_6 = arith.constant 0 : index
      %12 = vector.load %arg3[%c0, %c0_5, %c0_6] : memref<1x8x8xbf16, #tpu.memory_space<vmem>>, vector<1x8x8xbf16>
      %13 = vector.shape_cast %12 : vector<1x8x8xbf16> to vector<8x8xbf16>
      %c0_7 = arith.constant 0 : index
      %c0_8 = arith.constant 0 : index
      %c0_9 = arith.constant 0 : index
      %14 = vector.load %arg4[%c0_7, %c0_8, %c0_9] : memref<1x8x8xbf16, #tpu.memory_space<vmem>>, vector<1x8x8xbf16>
      %15 = vector.shape_cast %14 : vector<1x8x8xbf16> to vector<8x8xbf16>
      %cst = arith.constant dense<0.000000e+00> : vector<8x8xf32>
      %16 = tpu.matmul %13, %15, %cst {dimension_numbers = #tpu.dot_dimension_numbers<[1], [1], [0], [0], [0, 0, 1, 0], [], []>} : vector<8x8xbf16>, vector<8x8xbf16>, vector<8x8xf32> -> vector<8x8xf32>
      %c0_10 = arith.constant 0 : index
      %c0_11 = arith.constant 0 : index
      %17 = vector.load %arg7[%c0_10, %c0_11] : memref<8x1xf32, #tpu.memory_space<vmem>>, vector<8x1xf32>
      %cst_12 = arith.constant dense<0xFF800000> : vector<8xf32>
      %18 = vector.multi_reduction <maximumf>, %16, %cst_12 [1] : vector<8x8xf32> to vector<8xf32>
      %19 = vector.shape_cast %18 : vector<8xf32> to vector<8x1xf32>
      %20 = arith.maximumf %17, %19 : vector<8x1xf32>
      %21 = arith.subf %17, %20 : vector<8x1xf32>
      %22 = math.exp %21 : vector<8x1xf32>
      %23 = vector.broadcast %20 : vector<8x1xf32> to vector<8x8xf32>
      %24 = arith.subf %16, %23 : vector<8x8xf32>
      %25 = math.exp %24 : vector<8x8xf32>
      %c0_13 = arith.constant 0 : index
      %c0_14 = arith.constant 0 : index
      %26 = vector.load %arg8[%c0_13, %c0_14] : memref<8x1xf32, #tpu.memory_space<vmem>>, vector<8x1xf32>
      %27 = arith.mulf %22, %26 : vector<8x1xf32>
      %cst_15 = arith.constant dense<0.000000e+00> : vector<8xf32>
      %28 = vector.multi_reduction <add>, %25, %cst_15 [1] : vector<8x8xf32> to vector<8xf32>
      %29 = vector.shape_cast %28 : vector<8xf32> to vector<8x1xf32>
      %30 = arith.addf %27, %29 : vector<8x1xf32>
      %c0_16 = arith.constant 0 : index
      %c0_17 = arith.constant 0 : index
      %31 = vector.load %arg8[%c0_16, %c0_17] : memref<8x1xf32, #tpu.memory_space<vmem>>, vector<8x1xf32>
      tpu.vector_store %arg8[%c0_16, %c0_17], %30 {strides = array<i32>} : memref<8x1xf32, #tpu.memory_space<vmem>>, vector<8x1xf32>,
      %c0_18 = arith.constant 0 : index
      %c0_19 = arith.constant 0 : index
      %32 = vector.load %arg9[%c0_18, %c0_19] : memref<8x8xf32, #tpu.memory_space<vmem>>, vector<8x8xf32>
      %33 = vector.broadcast %22 : vector<8x1xf32> to vector<8x8xf32>
      %34 = arith.mulf %33, %32 : vector<8x8xf32>
      %35 = arith.truncf %25 : vector<8x8xf32> to vector<8x8xbf16>
      %c0_20 = arith.constant 0 : index
      %c0_21 = arith.constant 0 : index
      %c0_22 = arith.constant 0 : index
      %36 = vector.load %arg5[%c0_20, %c0_21, %c0_22] : memref<1x8x8xbf16, #tpu.memory_space<vmem>>, vector<1x8x8xbf16>
      %37 = vector.shape_cast %36 : vector<1x8x8xbf16> to vector<8x8xbf16>
      %cst_23 = arith.constant dense<0.000000e+00> : vector<8x8xf32>
      %38 = tpu.matmul %35, %37, %cst_23 {dimension_numbers = #tpu.dot_dimension_numbers<[1], [0], [0], [1], [0, 0, 1, 1], [], []>} : vector<8x8xbf16>, vector<8x8xbf16>, vector<8x8xf32> -> vector<8x8xf32>
      %39 = arith.addf %34, %38 : vector<8x8xf32>
      %c0_24 = arith.constant 0 : index
      %c0_25 = arith.constant 0 : index
      %40 = vector.load %arg9[%c0_24, %c0_25] : memref<8x8xf32, #tpu.memory_space<vmem>>, vector<8x8xf32>
      tpu.vector_store %arg9[%c0_24, %c0_25], %39 {strides = array<i32>} : memref<8x8xf32, #tpu.memory_space<vmem>>, vector<8x8xf32>,
      %c0_26 = arith.constant 0 : index
      %c0_27 = arith.constant 0 : index
      %41 = vector.load %arg7[%c0_26, %c0_27] : memref<8x1xf32, #tpu.memory_space<vmem>>, vector<8x1xf32>
      tpu.vector_store %arg7[%c0_26, %c0_27], %20 {strides = array<i32>} : memref<8x1xf32, #tpu.memory_space<vmem>>, vector<8x1xf32>,
    } else {
    }
    %6 = arith.cmpi eq, %arg2, %arg1 : i32
    %7 = arith.extui %6 : i1 to i32
    %c0_i32_2 = arith.constant 0 : i32
    %8 = arith.cmpi ne, %7, %c0_i32_2 : i32
    scf.if %8 {
      %c0 = arith.constant 0 : index
      %c0_5 = arith.constant 0 : index
      %c0_6 = arith.constant 0 : index
      %12 = vector.load %arg3[%c0, %c0_5, %c0_6] : memref<1x8x8xbf16, #tpu.memory_space<vmem>>, vector<1x8x8xbf16>
      %13 = vector.shape_cast %12 : vector<1x8x8xbf16> to vector<8x8xbf16>
      %c0_7 = arith.constant 0 : index
      %c0_8 = arith.constant 0 : index
      %c0_9 = arith.constant 0 : index
      %14 = vector.load %arg4[%c0_7, %c0_8, %c0_9] : memref<1x8x8xbf16, #tpu.memory_space<vmem>>, vector<1x8x8xbf16>
      %15 = vector.shape_cast %14 : vector<1x8x8xbf16> to vector<8x8xbf16>
      %cst = arith.constant dense<0.000000e+00> : vector<8x8xf32>
      %16 = tpu.matmul %13, %15, %cst {dimension_numbers = #tpu.dot_dimension_numbers<[1], [1], [0], [0], [0, 0, 1, 0], [], []>} : vector<8x8xbf16>, vector<8x8xbf16>, vector<8x8xf32> -> vector<8x8xf32>
      %17 = tpu.iota {dimensions = array<i32: 0>} : vector<8x8xi32>
      %18 = tpu.iota {dimensions = array<i32: 1>} : vector<8x8xi32>
      %19 = arith.cmpi sle, %18, %17 : vector<8x8xi32>
      %cst_10 = arith.constant -1.000000e+30 : f32
      %20 = vector.broadcast %cst_10 : f32 to vector<8x8xf32>
      %21 = arith.select %19, %16, %20 : vector<8x8xi1>, vector<8x8xf32>
      %c0_11 = arith.constant 0 : index
      %c0_12 = arith.constant 0 : index
      %22 = vector.load %arg7[%c0_11, %c0_12] : memref<8x1xf32, #tpu.memory_space<vmem>>, vector<8x1xf32>
      %cst_13 = arith.constant dense<0xFF800000> : vector<8xf32>
      %23 = vector.multi_reduction <maximumf>, %21, %cst_13 [1] : vector<8x8xf32> to vector<8xf32>
      %24 = vector.shape_cast %23 : vector<8xf32> to vector<8x1xf32>
      %25 = arith.maximumf %22, %24 : vector<8x1xf32>
      %26 = arith.subf %22, %25 : vector<8x1xf32>
      %27 = math.exp %26 : vector<8x1xf32>
      %28 = vector.broadcast %25 : vector<8x1xf32> to vector<8x8xf32>
      %29 = arith.subf %21, %28 : vector<8x8xf32>
      %30 = math.exp %29 : vector<8x8xf32>
      %c0_14 = arith.constant 0 : index
      %c0_15 = arith.constant 0 : index
      %31 = vector.load %arg8[%c0_14, %c0_15] : memref<8x1xf32, #tpu.memory_space<vmem>>, vector<8x1xf32>
      %32 = arith.mulf %27, %31 : vector<8x1xf32>
      %cst_16 = arith.constant dense<0.000000e+00> : vector<8xf32>
      %33 = vector.multi_reduction <add>, %30, %cst_16 [1] : vector<8x8xf32> to vector<8xf32>
      %34 = vector.shape_cast %33 : vector<8xf32> to vector<8x1xf32>
      %35 = arith.addf %32, %34 : vector<8x1xf32>
      %c0_17 = arith.constant 0 : index
      %c0_18 = arith.constant 0 : index
      %36 = vector.load %arg8[%c0_17, %c0_18] : memref<8x1xf32, #tpu.memory_space<vmem>>, vector<8x1xf32>
      tpu.vector_store %arg8[%c0_17, %c0_18], %35 {strides = array<i32>} : memref<8x1xf32, #tpu.memory_space<vmem>>, vector<8x1xf32>,
      %c0_19 = arith.constant 0 : index
      %c0_20 = arith.constant 0 : index
      %37 = vector.load %arg9[%c0_19, %c0_20] : memref<8x8xf32, #tpu.memory_space<vmem>>, vector<8x8xf32>
      %38 = vector.broadcast %27 : vector<8x1xf32> to vector<8x8xf32>
      %39 = arith.mulf %38, %37 : vector<8x8xf32>
      %40 = arith.truncf %30 : vector<8x8xf32> to vector<8x8xbf16>
      %c0_21 = arith.constant 0 : index
      %c0_22 = arith.constant 0 : index
      %c0_23 = arith.constant 0 : index
      %41 = vector.load %arg5[%c0_21, %c0_22, %c0_23] : memref<1x8x8xbf16, #tpu.memory_space<vmem>>, vector<1x8x8xbf16>
      %42 = vector.shape_cast %41 : vector<1x8x8xbf16> to vector<8x8xbf16>
      %cst_24 = arith.constant dense<0.000000e+00> : vector<8x8xf32>
      %43 = tpu.matmul %40, %42, %cst_24 {dimension_numbers = #tpu.dot_dimension_numbers<[1], [0], [0], [1], [0, 0, 1, 1], [], []>} : vector<8x8xbf16>, vector<8x8xbf16>, vector<8x8xf32> -> vector<8x8xf32>
      %44 = arith.addf %39, %43 : vector<8x8xf32>
      %c0_25 = arith.constant 0 : index
      %c0_26 = arith.constant 0 : index
      %45 = vector.load %arg9[%c0_25, %c0_26] : memref<8x8xf32, #tpu.memory_space<vmem>>, vector<8x8xf32>
      tpu.vector_store %arg9[%c0_25, %c0_26], %44 {strides = array<i32>} : memref<8x8xf32, #tpu.memory_space<vmem>>, vector<8x8xf32>,
      %c0_27 = arith.constant 0 : index
      %c0_28 = arith.constant 0 : index
      %46 = vector.load %arg7[%c0_27, %c0_28] : memref<8x1xf32, #tpu.memory_space<vmem>>, vector<8x1xf32>
      tpu.vector_store %arg7[%c0_27, %c0_28], %25 {strides = array<i32>} : memref<8x1xf32, #tpu.memory_space<vmem>>, vector<8x1xf32>,
    } else {
    }
    %c0_i32_3 = arith.constant 0 : i32
    %9 = arith.cmpi eq, %arg2, %c0_i32_3 : i32
    %10 = arith.extui %9 : i1 to i32
    %c0_i32_4 = arith.constant 0 : i32
    %11 = arith.cmpi ne, %10, %c0_i32_4 : i32
    scf.if %11 {
      %c0 = arith.constant 0 : index
      %c0_5 = arith.constant 0 : index
      %12 = vector.load %arg9[%c0, %c0_5] : memref<8x8xf32, #tpu.memory_space<vmem>>, vector<8x8xf32>
      %c0_6 = arith.constant 0 : index
      %c0_7 = arith.constant 0 : index
      %13 = vector.load %arg8[%c0_6, %c0_7] : memref<8x1xf32, #tpu.memory_space<vmem>>, vector<8x1xf32>
      %14 = tpu.reciprocal %13 {approx = true} : vector<8x1xf32> -> vector<8x1xf32>
      %15 = vector.broadcast %14 : vector<8x1xf32> to vector<8x8xf32>
      %16 = arith.mulf %12, %15 : vector<8x8xf32>
      %17 = arith.truncf %16 : vector<8x8xf32> to vector<8x8xbf16>
      %c0_8 = arith.constant 0 : index
      %c0_9 = arith.constant 0 : index
      %c0_10 = arith.constant 0 : index
      %18 = vector.load %arg6[%c0_8, %c0_9, %c0_10] : memref<1x8x8xbf16, #tpu.memory_space<vmem>>, vector<1x8x8xbf16>
      %19 = vector.shape_cast %18 : vector<1x8x8xbf16> to vector<8x8xbf16>
      %20 = vector.shape_cast %17 : vector<8x8xbf16> to vector<1x8x8xbf16>
      tpu.vector_store %arg6[%c0_8, %c0_9, %c0_10], %20 {strides = array<i32>} : memref<1x8x8xbf16, #tpu.memory_space<vmem>>, vector<1x8x8xbf16>,
    } else {
    }
    return
  }
  func.func @transform_0(%arg0: i32, %arg1: i32, %arg2: i32) -> (i32, i32, i32) {
    %c0_i32 = arith.constant 0 : i32
    %c0_i32_0 = arith.constant 0 : i32
    return %arg0, %arg1, %c0_i32 : i32, i32, i32
  }
  func.func @transform_1(%arg0: i32, %arg1: i32, %arg2: i32) -> (i32, i32, i32) {
    %0 = arith.minsi %arg1, %arg2 : i32
    %c0_i32 = arith.constant 0 : i32
    %c0_i32_0 = arith.constant 0 : i32
    return %arg0, %0, %c0_i32 : i32, i32, i32
  }
  func.func @transform_2(%arg0: i32, %arg1: i32, %arg2: i32) -> (i32, i32, i32) {
    %0 = arith.minsi %arg1, %arg2 : i32
    %c0_i32 = arith.constant 0 : i32
    %c0_i32_0 = arith.constant 0 : i32
    return %arg0, %0, %c0_i32 : i32, i32, i32
  }
  func.func @transform_3(%arg0: i32, %arg1: i32, %arg2: i32) -> (i32, i32, i32) {
    %c0_i32 = arith.constant 0 : i32
    %c0_i32_0 = arith.constant 0 : i32
    return %arg0, %arg1, %c0_i32 : i32, i32, i32
  }
}

module attributes {stable_mosaic.version = 11 : i64} {
  func.func @_matmul_res_kernel(%arg0: i32, %arg1: i32, %arg2: memref<16x32xbf16, #tpu.memory_space<vmem>>, %arg3: memref<32x32xbf16, #tpu.memory_space<vmem>>, %arg4: memref<16x32xf32, #tpu.memory_space<vmem>>, %arg5: memref<16x32xf32, #tpu.memory_space<vmem>>) attributes {dimension_semantics = [#tpu.dimension_semantics<parallel>, #tpu.dimension_semantics<parallel>], iteration_bounds = array<i64: 1, 1>, scalar_prefetch = 0 : i64, scratch_operands = 0 : i64, tpu.core_type = #tpu.core_type<tc>, window_params = [{transform_indices = @transform_0, window_bounds = array<i64: 16, 32>}, {transform_indices = @transform_1, window_bounds = array<i64: 32, 32>}, {transform_indices = @transform_2, window_bounds = array<i64: 16, 32>}, {transform_indices = @transform_3, window_bounds = array<i64: 16, 32>}]} {
    %c0 = arith.constant 0 : index
    %c0_0 = arith.constant 0 : index
    %0 = vector.load %arg4[%c0, %c0_0] : memref<16x32xf32, #tpu.memory_space<vmem>>, vector<16x32xf32>
    %c0_1 = arith.constant 0 : index
    %c0_2 = arith.constant 0 : index
    %1 = vector.load %arg2[%c0_1, %c0_2] : memref<16x32xbf16, #tpu.memory_space<vmem>>, vector<16x32xbf16>
    %c0_3 = arith.constant 0 : index
    %c0_4 = arith.constant 0 : index
    %2 = vector.load %arg3[%c0_3, %c0_4] : memref<32x32xbf16, #tpu.memory_space<vmem>>, vector<32x32xbf16>
    %cst = arith.constant dense<0.000000e+00> : vector<16x32xf32>
    %3 = tpu.matmul %1, %2, %cst {dimension_numbers = #tpu.dot_dimension_numbers<[1], [0], [0], [1], [0, 0, 1, 1], [], []>} : vector<16x32xbf16>, vector<32x32xbf16>, vector<16x32xf32> -> vector<16x32xf32>
    %4 = arith.addf %0, %3 : vector<16x32xf32>
    %c0_5 = arith.constant 0 : index
    %c0_6 = arith.constant 0 : index
    %5 = vector.load %arg5[%c0_5, %c0_6] : memref<16x32xf32, #tpu.memory_space<vmem>>, vector<16x32xf32>
    tpu.vector_store %arg5[%c0_5, %c0_6], %4 {strides = array<i32>} : memref<16x32xf32, #tpu.memory_space<vmem>>, vector<16x32xf32>,
    return
  }
  func.func @transform_0(%arg0: i32, %arg1: i32) -> (i32, i32) {
    %c0_i32 = arith.constant 0 : i32
    %c0_i32_0 = arith.constant 0 : i32
    return %arg0, %c0_i32 : i32, i32
  }
  func.func @transform_1(%arg0: i32, %arg1: i32) -> (i32, i32) {
    %c0_i32 = arith.constant 0 : i32
    %c0_i32_0 = arith.constant 0 : i32
    return %c0_i32, %arg1 : i32, i32
  }
  func.func @transform_2(%arg0: i32, %arg1: i32) -> (i32, i32) {
    %c0_i32 = arith.constant 0 : i32
    return %arg0, %arg1 : i32, i32
  }
  func.func @transform_3(%arg0: i32, %arg1: i32) -> (i32, i32) {
    %c0_i32 = arith.constant 0 : i32
    return %arg0, %arg1 : i32, i32
  }
}

module attributes {stable_mosaic.version = 11 : i64} {
  func.func @_norm_swiglu_res_kernel(%arg0: i32, %arg1: i32, %arg2: memref<16x32xf32, #tpu.memory_space<vmem>>, %arg3: memref<1x32xf32, #tpu.memory_space<vmem>>, %arg4: memref<32x64xbf16, #tpu.memory_space<vmem>>, %arg5: memref<32x64xbf16, #tpu.memory_space<vmem>>, %arg6: memref<64x32xbf16, #tpu.memory_space<vmem>>, %arg7: memref<16x32xf32, #tpu.memory_space<vmem>>, %arg8: memref<16x32xbf16, #tpu.memory_space<vmem>>, %arg9: memref<16x32xf32, #tpu.memory_space<vmem>>) attributes {dimension_semantics = [#tpu.dimension_semantics<parallel>, #tpu.dimension_semantics<arbitrary>], iteration_bounds = array<i64: 1, 1>, scalar_prefetch = 0 : i64, scratch_operands = 2 : i64, tpu.core_type = #tpu.core_type<tc>, window_params = [{transform_indices = @transform_0, window_bounds = array<i64: 16, 32>}, {pipeline_mode = #tpu.pipeline_mode<synchronous>, transform_indices = @transform_1, window_bounds = array<i64: 1, 32>}, {transform_indices = @transform_2, window_bounds = array<i64: 32, 64>}, {transform_indices = @transform_3, window_bounds = array<i64: 32, 64>}, {transform_indices = @transform_4, window_bounds = array<i64: 64, 32>}, {transform_indices = @transform_5, window_bounds = array<i64: 16, 32>}]} {
    %c0_i32 = arith.constant 0 : i32
    %0 = arith.cmpi eq, %arg1, %c0_i32 : i32
    %1 = arith.extui %0 : i1 to i32
    %c0_i32_0 = arith.constant 0 : i32
    %2 = arith.cmpi ne, %1, %c0_i32_0 : i32
    scf.if %2 {
      %c0_17 = arith.constant 0 : index
      %c0_18 = arith.constant 0 : index
      %24 = vector.load %arg2[%c0_17, %c0_18] : memref<16x32xf32, #tpu.memory_space<vmem>>, vector<16x32xf32>
      %25 = arith.mulf %24, %24 : vector<16x32xf32>
      %cst_19 = arith.constant dense<0.000000e+00> : vector<16xf32>
      %26 = vector.multi_reduction <add>, %25, %cst_19 [1] : vector<16x32xf32> to vector<16xf32>
      %27 = vector.shape_cast %26 : vector<16xf32> to vector<16x1xf32>
      %cst_20 = arith.constant 3.200000e+01 : f32
      %28 = vector.broadcast %cst_20 : f32 to vector<16x1xf32>
      %29 = arith.divf %27, %28 : vector<16x1xf32>
      %cst_21 = arith.constant 9.99999974E-6 : f32
      %30 = vector.broadcast %cst_21 : f32 to vector<16x1xf32>
      %31 = arith.addf %29, %30 : vector<16x1xf32>
      %32 = math.rsqrt %31 : vector<16x1xf32>
      %33 = vector.broadcast %32 : vector<16x1xf32> to vector<16x32xf32>
      %34 = arith.mulf %24, %33 : vector<16x32xf32>
      %c0_22 = arith.constant 0 : index
      %c0_23 = arith.constant 0 : index
      %35 = vector.load %arg3[%c0_22, %c0_23] : memref<1x32xf32, #tpu.memory_space<vmem>>, vector<1x32xf32>
      %36 = vector.broadcast %35 : vector<1x32xf32> to vector<16x32xf32>
      %37 = arith.mulf %34, %36 : vector<16x32xf32>
      %38 = arith.truncf %37 : vector<16x32xf32> to vector<16x32xbf16>
      %c0_24 = arith.constant 0 : index
      %c0_25 = arith.constant 0 : index
      %39 = vector.load %arg8[%c0_24, %c0_25] : memref<16x32xbf16, #tpu.memory_space<vmem>>, vector<16x32xbf16>
      tpu.vector_store %arg8[%c0_24, %c0_25], %38 {strides = array<i32>} : memref<16x32xbf16, #tpu.memory_space<vmem>>, vector<16x32xbf16>,
      %c0_26 = arith.constant 0 : index
      %c0_27 = arith.constant 0 : index
      %40 = vector.load %arg9[%c0_26, %c0_27] : memref<16x32xf32, #tpu.memory_space<vmem>>, vector<16x32xf32>
      tpu.vector_store %arg9[%c0_26, %c0_27], %24 {strides = array<i32>} : memref<16x32xf32, #tpu.memory_space<vmem>>, vector<16x32xf32>,
    } else {
    }
    %c0 = arith.constant 0 : index
    %c0_1 = arith.constant 0 : index
    %3 = vector.load %arg8[%c0, %c0_1] : memref<16x32xbf16, #tpu.memory_space<vmem>>, vector<16x32xbf16>
    %c0_2 = arith.constant 0 : index
    %c0_3 = arith.constant 0 : index
    %4 = vector.load %arg4[%c0_2, %c0_3] : memref<32x64xbf16, #tpu.memory_space<vmem>>, vector<32x64xbf16>
    %cst = arith.constant dense<0.000000e+00> : vector<16x64xf32>
    %5 = tpu.matmul %3, %4, %cst {dimension_numbers = #tpu.dot_dimension_numbers<[1], [0], [0], [1], [0, 0, 1, 1], [], []>} : vector<16x32xbf16>, vector<32x64xbf16>, vector<16x64xf32> -> vector<16x64xf32>
    %c0_4 = arith.constant 0 : index
    %c0_5 = arith.constant 0 : index
    %6 = vector.load %arg5[%c0_4, %c0_5] : memref<32x64xbf16, #tpu.memory_space<vmem>>, vector<32x64xbf16>
    %cst_6 = arith.constant dense<0.000000e+00> : vector<16x64xf32>
    %7 = tpu.matmul %3, %6, %cst_6 {dimension_numbers = #tpu.dot_dimension_numbers<[1], [0], [0], [1], [0, 0, 1, 1], [], []>} : vector<16x32xbf16>, vector<32x64xbf16>, vector<16x64xf32> -> vector<16x64xf32>
    %8 = arith.negf %5 : vector<16x64xf32>
    %9 = math.exp %8 : vector<16x64xf32>
    %cst_7 = arith.constant 1.000000e+00 : f32
    %10 = vector.broadcast %cst_7 : f32 to vector<16x64xf32>
    %11 = arith.addf %10, %9 : vector<16x64xf32>
    %12 = arith.divf %10, %11 : vector<16x64xf32>
    %13 = arith.mulf %5, %12 : vector<16x64xf32>
    %14 = arith.mulf %13, %7 : vector<16x64xf32>
    %15 = arith.truncf %14 : vector<16x64xf32> to vector<16x64xbf16>
    %c0_8 = arith.constant 0 : index
    %c0_9 = arith.constant 0 : index
    %16 = vector.load %arg9[%c0_8, %c0_9] : memref<16x32xf32, #tpu.memory_space<vmem>>, vector<16x32xf32>
    %c0_10 = arith.constant 0 : index
    %c0_11 = arith.constant 0 : index
    %17 = vector.load %arg6[%c0_10, %c0_11] : memref<64x32xbf16, #tpu.memory_space<vmem>>, vector<64x32xbf16>
    %cst_12 = arith.constant dense<0.000000e+00> : vector<16x32xf32>
    %18 = tpu.matmul %15, %17, %cst_12 {dimension_numbers = #tpu.dot_dimension_numbers<[1], [0], [0], [1], [0, 0, 1, 1], [], []>} : vector<16x64xbf16>, vector<64x32xbf16>, vector<16x32xf32> -> vector<16x32xf32>
    %19 = arith.addf %16, %18 : vector<16x32xf32>
    %c0_13 = arith.constant 0 : index
    %c0_14 = arith.constant 0 : index
    %20 = vector.load %arg9[%c0_13, %c0_14] : memref<16x32xf32, #tpu.memory_space<vmem>>, vector<16x32xf32>
    tpu.vector_store %arg9[%c0_13, %c0_14], %19 {strides = array<i32>} : memref<16x32xf32, #tpu.memory_space<vmem>>, vector<16x32xf32>,
    %c0_i32_15 = arith.constant 0 : i32
    %21 = arith.cmpi eq, %arg1, %c0_i32_15 : i32
    %22 = arith.extui %21 : i1 to i32
    %c0_i32_16 = arith.constant 0 : i32
    %23 = arith.cmpi ne, %22, %c0_i32_16 : i32
    scf.if %23 {
      %c0_17 = arith.constant 0 : index
      %c0_18 = arith.constant 0 : index
      %24 = vector.load %arg9[%c0_17, %c0_18] : memref<16x32xf32, #tpu.memory_space<vmem>>, vector<16x32xf32>
      %c0_19 = arith.constant 0 : index
      %c0_20 = arith.constant 0 : index
      %25 = vector.load %arg7[%c0_19, %c0_20] : memref<16x32xf32, #tpu.memory_space<vmem>>, vector<16x32xf32>
      tpu.vector_store %arg7[%c0_19, %c0_20], %24 {strides = array<i32>} : memref<16x32xf32, #tpu.memory_space<vmem>>, vector<16x32xf32>,
    } else {
    }
    return
  }
  func.func @transform_0(%arg0: i32, %arg1: i32) -> (i32, i32) {
    %c0_i32 = arith.constant 0 : i32
    %c0_i32_0 = arith.constant 0 : i32
    return %arg0, %c0_i32 : i32, i32
  }
  func.func @transform_1(%arg0: i32, %arg1: i32) -> (i32, i32) {
    %c0_i32 = arith.constant 0 : i32
    %c0_i32_0 = arith.constant 0 : i32
    %c0_i32_1 = arith.constant 0 : i32
    return %c0_i32, %c0_i32_0 : i32, i32
  }
  func.func @transform_2(%arg0: i32, %arg1: i32) -> (i32, i32) {
    %c0_i32 = arith.constant 0 : i32
    %c0_i32_0 = arith.constant 0 : i32
    return %c0_i32, %arg1 : i32, i32
  }
  func.func @transform_3(%arg0: i32, %arg1: i32) -> (i32, i32) {
    %c0_i32 = arith.constant 0 : i32
    %c0_i32_0 = arith.constant 0 : i32
    return %c0_i32, %arg1 : i32, i32
  }
  func.func @transform_4(%arg0: i32, %arg1: i32) -> (i32, i32) {
    %c0_i32 = arith.constant 0 : i32
    %c0_i32_0 = arith.constant 0 : i32
    return %arg1, %c0_i32 : i32, i32
  }
  func.func @transform_5(%arg0: i32, %arg1: i32) -> (i32, i32) {
    %c0_i32 = arith.constant 0 : i32
    %c0_i32_0 = arith.constant 0 : i32
    return %arg0, %c0_i32 : i32, i32
  }
}

module attributes {stable_mosaic.version = 11 : i64} {
  func.func @_norm_matmul_kernel(%arg0: i32, %arg1: i32, %arg2: memref<16x32xf32, #tpu.memory_space<vmem>>, %arg3: memref<1x32xf32, #tpu.memory_space<vmem>>, %arg4: memref<32x64xbf16, #tpu.memory_space<vmem>>, %arg5: memref<16x64xf32, #tpu.memory_space<vmem>>, %arg6: memref<16x32xbf16, #tpu.memory_space<vmem>>) attributes {dimension_semantics = [#tpu.dimension_semantics<parallel>, #tpu.dimension_semantics<arbitrary>], iteration_bounds = array<i64: 1, 1>, scalar_prefetch = 0 : i64, scratch_operands = 1 : i64, tpu.core_type = #tpu.core_type<tc>, window_params = [{transform_indices = @transform_0, window_bounds = array<i64: 16, 32>}, {pipeline_mode = #tpu.pipeline_mode<synchronous>, transform_indices = @transform_1, window_bounds = array<i64: 1, 32>}, {transform_indices = @transform_2, window_bounds = array<i64: 32, 64>}, {transform_indices = @transform_3, window_bounds = array<i64: 16, 64>}]} {
    %c0_i32 = arith.constant 0 : i32
    %0 = arith.cmpi eq, %arg1, %c0_i32 : i32
    %1 = arith.extui %0 : i1 to i32
    %c0_i32_0 = arith.constant 0 : i32
    %2 = arith.cmpi ne, %1, %c0_i32_0 : i32
    scf.if %2 {
      %c0_6 = arith.constant 0 : index
      %c0_7 = arith.constant 0 : index
      %7 = vector.load %arg2[%c0_6, %c0_7] : memref<16x32xf32, #tpu.memory_space<vmem>>, vector<16x32xf32>
      %8 = arith.mulf %7, %7 : vector<16x32xf32>
      %cst_8 = arith.constant dense<0.000000e+00> : vector<16xf32>
      %9 = vector.multi_reduction <add>, %8, %cst_8 [1] : vector<16x32xf32> to vector<16xf32>
      %10 = vector.shape_cast %9 : vector<16xf32> to vector<16x1xf32>
      %cst_9 = arith.constant 3.200000e+01 : f32
      %11 = vector.broadcast %cst_9 : f32 to vector<16x1xf32>
      %12 = arith.divf %10, %11 : vector<16x1xf32>
      %cst_10 = arith.constant 9.99999974E-6 : f32
      %13 = vector.broadcast %cst_10 : f32 to vector<16x1xf32>
      %14 = arith.addf %12, %13 : vector<16x1xf32>
      %15 = math.rsqrt %14 : vector<16x1xf32>
      %16 = vector.broadcast %15 : vector<16x1xf32> to vector<16x32xf32>
      %17 = arith.mulf %7, %16 : vector<16x32xf32>
      %c0_11 = arith.constant 0 : index
      %c0_12 = arith.constant 0 : index
      %18 = vector.load %arg3[%c0_11, %c0_12] : memref<1x32xf32, #tpu.memory_space<vmem>>, vector<1x32xf32>
      %19 = vector.broadcast %18 : vector<1x32xf32> to vector<16x32xf32>
      %20 = arith.mulf %17, %19 : vector<16x32xf32>
      %21 = arith.truncf %20 : vector<16x32xf32> to vector<16x32xbf16>
      %c0_13 = arith.constant 0 : index
      %c0_14 = arith.constant 0 : index
      %22 = vector.load %arg6[%c0_13, %c0_14] : memref<16x32xbf16, #tpu.memory_space<vmem>>, vector<16x32xbf16>
      tpu.vector_store %arg6[%c0_13, %c0_14], %21 {strides = array<i32>} : memref<16x32xbf16, #tpu.memory_space<vmem>>, vector<16x32xbf16>,
    } else {
    }
    %c0 = arith.constant 0 : index
    %c0_1 = arith.constant 0 : index
    %3 = vector.load %arg6[%c0, %c0_1] : memref<16x32xbf16, #tpu.memory_space<vmem>>, vector<16x32xbf16>
    %c0_2 = arith.constant 0 : index
    %c0_3 = arith.constant 0 : index
    %4 = vector.load %arg4[%c0_2, %c0_3] : memref<32x64xbf16, #tpu.memory_space<vmem>>, vector<32x64xbf16>
    %cst = arith.constant dense<0.000000e+00> : vector<16x64xf32>
    %5 = tpu.matmul %3, %4, %cst {dimension_numbers = #tpu.dot_dimension_numbers<[1], [0], [0], [1], [0, 0, 1, 1], [], []>} : vector<16x32xbf16>, vector<32x64xbf16>, vector<16x64xf32> -> vector<16x64xf32>
    %c0_4 = arith.constant 0 : index
    %c0_5 = arith.constant 0 : index
    %6 = vector.load %arg5[%c0_4, %c0_5] : memref<16x64xf32, #tpu.memory_space<vmem>>, vector<16x64xf32>
    tpu.vector_store %arg5[%c0_4, %c0_5], %5 {strides = array<i32>} : memref<16x64xf32, #tpu.memory_space<vmem>>, vector<16x64xf32>,
    return
  }
  func.func @transform_0(%arg0: i32, %arg1: i32) -> (i32, i32) {
    %c0_i32 = arith.constant 0 : i32
    %c0_i32_0 = arith.constant 0 : i32
    return %arg0, %c0_i32 : i32, i32
  }
  func.func @transform_1(%arg0: i32, %arg1: i32) -> (i32, i32) {
    %c0_i32 = arith.constant 0 : i32
    %c0_i32_0 = arith.constant 0 : i32
    %c0_i32_1 = arith.constant 0 : i32
    return %c0_i32, %c0_i32_0 : i32, i32
  }
  func.func @transform_2(%arg0: i32, %arg1: i32) -> (i32, i32) {
    %c0_i32 = arith.constant 0 : i32
    %c0_i32_0 = arith.constant 0 : i32
    return %c0_i32, %arg1 : i32, i32
  }
  func.func @transform_3(%arg0: i32, %arg1: i32) -> (i32, i32) {
    %c0_i32 = arith.constant 0 : i32
    return %arg0, %arg1 : i32, i32
  }
}

</mosaic_0001>

<bundles_post_ra>
// kernel: tile.6
= control target key start
LH: loop header
LB: loop body
LE: loop exit
PB: predicated region body
PF: predicated region fallthrough
CT: control target
= control target key end

     0   :  { %s22_s0 = inlined_call_operand.vmem [shape: f32[2], index: 0, kind: input, shape index: {}]   ;;  %s23_s1 = inlined_call_operand.vmem [shape: f32[4,2], index: 1, kind: output, shape index: {}]  }
   0x1   :  { %v4_v0 = vld [vmem:[%s22_s0] ss:$0 sm:$0xff] }
   0x2   :  { %5 = vst [vmem:[%s23_s1] sm:$0xf] %v4_v0 }

// kernel: mul.25
= control target key start
LH: loop header
LB: loop body
LE: loop exit
PB: predicated region body
PF: predicated region fallthrough
CT: control target
= control target key end

     0   :  { %vm8_vm0 = vcmask 15360   ;;  %s40_s8 = smov 2   ;;  %s41_s9 = smov 4   ;;  %vm14_vm1 = vcmask 64560   ;;  %vm20_vm2 = vcmask 48160   ;;  %vm26_vm3 = vcmask 31760   ;;  %s58_s0 = inlined_call_operand.vmem [shape: f32[4,2], index: 0, kind: input, shape index: {}]   ;;  %s59_s1 = inlined_call_operand.vmem [shape: f32[8], index: 1, kind: output, shape index: {}]  }
   0x1   :  { %v5_v0 = vld [vmem:[%s58_s0] sm:$0xf]  ;;  %s39_s0 = smov 6  }
   0x2   :  { %6 = vst [vmem:[#allocation1] sm:$0xf] %v5_v0 }
   0x9   :  { %v11_v1 = vld [vmem:[#allocation1 + $0x3] sm:$0x1]   ;;  %v23_v2 = vld [vmem:[#allocation1 + $0x1] sm:$0x1]   ;;  %v7_v3 = vld [vmem:[#allocation1] sm:$0x1]  }
   0xa   :  { %12 = vrot.lane.b32.xlu0 %v11_v1, %s39_s0  ;;  %24 = vrot.lane.b32.xlu1 %v23_v2, %s40_s8  ;;  %v17_v4 = vld [vmem:[#allocation1 + $0x2] sm:$0x1]   ;;  %9 = vst.msk [vmem:[#allocation0] sm:$0x1] %vm8_vm0, %v7_v3  }
   0xe   :  { %18 = vrot.lane.b32.xlu0 %v17_v4, %s41_s9 }
  0x7c   :  { %v13_v5 = vpop.permute.xlu0 %12   ;;  %v25_v6 = vpop.permute.xlu1 %24  }
  0x7d   :  { %15 = vst.msk [vmem:[#allocation0] sm:$0x1] %vm14_vm1, %v13_v5  }
  0x80   :  { %v19_v7 = vpop.permute.xlu0 %18  }
  0x81   :  { %21 = vst.msk [vmem:[#allocation0] sm:$0x1] %vm20_vm2, %v19_v7  }
  0x82   :  { %27 = vst.msk [vmem:[#allocation0] sm:$0x1] %vm26_vm3, %v25_v6  }
  0x89   :  { %v32_v8 = vld [vmem:[#allocation0] sm:$0x1] }
  0x8a   :  { %35 = vst [vmem:[%s59_s1] sm:$0x1] %v32_v8 }

// kernel: xformer_lm_forward.14
= control target key start
LH: loop header
LB: loop body
LE: loop exit
PB: predicated region body
PF: predicated region fallthrough
CT: control target
= control target key end

     0   :  { %s544_s15 = smov 0   ;;  %s546_s16 = smov 0   ;;  %s586_s0 = inlined_call_operand.vmem [shape: bf16[8,8,8], index: 0, kind: input, shape index: {}]   ;;  %s587_s1 = inlined_call_operand.vmem [shape: f32[8,8], index: 1, kind: input, shape index: {}]   ;;  %s588_s2 = inlined_call_operand.vmem [shape: f32[8,8], index: 2, kind: input, shape index: {}]   ;;  %s589_s3 = inlined_call_operand.vmem [shape: f32[8,8], index: 3, kind: input, shape index: {}]   ;;  %s590_s4 = inlined_call_operand.vmem [shape: bf16[8,8,8], index: 4, kind: output, shape index: {}]  }
   0x1   :  { %s548_s17 = smov 0  }
   0x2 LB: > { %s26_s18 = sadd.s32 1, %s511_s16  ;;  %p454_p0 = scmp.ge.s32.totalorder %s515_s17, 1  ;;  %s515_s17 = sphi %s548_s17, %s14_s17   ;;  %s511_s16 = sphi %s546_s16, %s592_s16   ;;  %s507_s15 = sphi %s544_s15, %s591_s15  }
   0x3   : > { %p28_p1 = scmp.ge.s32.totalorder %s26_s18, 8  ;;  %p198_p2 = scmp.lt.s32.totalorder %s515_s17, 9 }
   0x5   : > { %s594_s18 = smov (%p28_p1, %s26_s18), 0  ;;  %p199_p3 = pnand %p454_p0, %p198_p2 }
   0x6   : > { %p236_p4 = scmp.lt.s32.totalorder (!%p199_p3), %s507_s15, 7 }
   0x7   : > { %202 = sbr.rel (%p199_p3) target bundleno = 218 (0xda), region = 36 }
   0xc   : > { %v262_v0 = vld [vmem:[%s589_s3] sm:$0xff]  ;;  %v517_v1 = vmov 0.0   ;;  %vm518_vm0 = vmmov 0   ;;  %s596_s15 = smov (!%p236_p4, %s507_s15), 7  ;;  %vm263_vm1 = vcmask 64512   ;;  %vm341_vm2 = vcmask 60416  }
   0xd   : > { %462 = vmatprep.subr.mxu0 %v517_v1  ;;  %464 = vmatprep.mubr.msk.f32.mxu0 %vm518_vm0, %v517_v1  ;;  %s455_s21 = sshll.u32 %s596_s15, 2  ;;  %v260_v4 = vld [vmem:[%s587_s1] sm:$0xff] }
   0xe   : > { %463 = vmatpush3.msra.mxu0 %v262_v0  ;;  %s242_s24 = scalar_lea.vmem %s586_s0, %s455_s21  ;;  %v337_v5 = vld [vmem:[%s588_s2] sm:$0xff]  ;;  %s257_s5 = scalar_lea.vmem %s590_s4, %s455_s21 }
   0xf   : > { %v258_v2 = vld [vmem:[%s242_s24] sm:$0xf] }
  0x10   : > { %v259_v3 = vunpack.c.l.bf16 %v258_v2 }
  0x12   : > { %465 = vmatmul.mubr.msk.f32.vlgmr.msra.gmra.mxu0 %vm263_vm1, %v259_v3  ;;  %v261_v6 = vmul.f32 %v260_v4, %v259_v3 }
  0xd2   : > { %v333_v7 = vpop.f32.mrf.mxu0 }
  0xd3   : > { %v338_v8 = vmul.f32 %v337_v5, %v333_v7 }
  0xd4   : > { %v466_v9 = vpop.f32.mrf.mxu0 }
  0xd5   : > { %v339_v10 = vadd.f32 %v338_v8, %v261_v6 }
  0xd7   : > { %v340_v11 = vpack.c.bf16 %v339_v10, %v339_v10 }
  0xd9   : > { %342 = vst.msk [vmem:[%s257_s5] sm:$0xf] %vm341_vm2, %v340_v11 }
  0xda PF: > { %s14_s17 = sadd.s32 1, %s515_s17   ;;  %s591_s15 = smov %s511_s16 }
  0xdb   : > { %p11_p5 = scmp.ge.s32.totalorder %s14_s17, 10   ;;  %s592_s16 = smov %s594_s18 }
  0xdd   :  { %13 = sbr.rel (!%p11_p5) target bundleno = 2 (0x2), region = 72 }

// kernel: xformer_lm_forward.17
= control target key start
LH: loop header
LB: loop body
LE: loop exit
PB: predicated region body
PF: predicated region fallthrough
CT: control target
= control target key end

     0   :  { %v113_v0 = vmov 0.0   ;;  %vm114_vm0 = vmmov 0   ;;  %vm40_vm1 = vcmask 261120   ;;  %s156_s1 = inlined_call_operand.vmem [shape: bf16[32,32], index: 1, kind: input, shape index: {}]   ;;  %s157_s0 = inlined_call_operand.vmem [shape: bf16[16,32], index: 0, kind: input, shape index: {}]   ;;  %s158_s2 = inlined_call_operand.vmem [shape: f32[16,32], index: 2, kind: input, shape index: {}]   ;;  %s159_s3 = inlined_call_operand.vmem [shape: f32[16,32], index: 3, kind: output, shape index: {}]  }
   0x1   :  { %100 = vmatprep.subr.bf16.mxu0 %v113_v0  ;;  %v110_v1 = vld [vmem:[%s156_s1 + $0x8] sm:$0xff]   ;;  %104 = vmatprep.mubr.msk.bf16.mxu0 %vm114_vm0, %v113_v0  ;;  %v111_v2 = vld [vmem:[%s156_s1] sm:$0xff]  }
   0x2   :  { %101 = vmatpush3.bf16.msra.mxu0 %v110_v1  ;;  %v112_v3 = vld [vmem:[%s157_s0] sm:$0xff]   ;;  %v16_v8 = vld [vmem:[%s158_s2 + $0x8] sm:$0xff] }
   0x3   :  { %102 = vmatprep.subr.bf16.mxu0 %v113_v0  ;;  %v15_v4 = vld [vmem:[%s158_s2] sm:$0xff] }
   0x6   :  { %103 = vmatpush3.bf16.msra.mxu0 %v111_v2 }
   0x9   :  { %105 = vmatmul.mubr.msk.bf16.vlgmr.msra.gmra.mxu0 %vm40_vm1, %v112_v3 }
  0xc9   :  { %v78_v5 = vpop.f32.mrf.mxu0 }
  0xca   :  { %v85_v6 = vadd.f32 %v78_v5, %v15_v4 }
  0xcb   :  { %v106_v7 = vpop.f32.mrf.mxu0 }
  0xcc   :  { %87 = vst.msk [vmem:[%s159_s3] sm:$0xff] %vm40_vm1, %v85_v6 }
  0xcd   :  { %v81_v9 = vpop.f32.mrf.mxu0 }
  0xce   :  { %v86_v10 = vadd.f32 %v81_v9, %v16_v8 }
  0xcf   :  { %v107_v11 = vpop.f32.mrf.mxu0 }
  0xd0   :  { %88 = vst.msk [vmem:[%s159_s3 + $0x8] sm:$0xff] %vm40_vm1, %v86_v10 }

// kernel: xformer_lm_forward.13
= control target key start
LH: loop header
LB: loop body
LE: loop exit
PB: predicated region body
PF: predicated region fallthrough
CT: control target
= control target key end

     0   :  { %vm23_vm0 = vcmask 261120   ;;  %v175_v7 = vmov 0.0   ;;  %vm176_vm1 = vmmov 0   ;;  %vm56_vm2 = vcmask 257024   ;;  %s221_s0 = inlined_call_operand.vmem [shape: f32[16,32], index: 0, kind: input, shape index: {}]   ;;  %s222_s2 = inlined_call_operand.vmem [shape: bf16[32,96], index: 2, kind: input, shape index: {}]   ;;  %s223_s1 = inlined_call_operand.vmem [shape: f32[1,32], index: 1, kind: input, shape index: {}]   ;;  %s224_s3 = inlined_call_operand.vmem [shape: bf16[16,96], index: 3, kind: output, shape index: {}]  }
   0x1   :  { %v19_v0 = vld [vmem:[%s221_s0] sm:$0xff]  ;;  %v20_v1 = vld [vmem:[%s221_s0 + $0x8] sm:$0xff]  ;;  %158 = vmatprep.subr.bf16.mxu0 %v175_v7  ;;  %162 = vmatprep.mubr.msk.bf16.mxu0 %vm176_vm1, %v175_v7  ;;  %vm135_vm3 = vcmask 781312  }
   0x2   :  { %v21_v2 = vmul.f32 %v19_v0, %v19_v0  ;;  %v22_v3 = vmul.f32 %v20_v1, %v20_v1  ;;  %v168_v6 = vld [vmem:[%s222_s2 + $0x8] sm:$0xff]   ;;  %v169_v8 = vld [vmem:[%s222_s2] sm:$0xff]  }
   0x3   :  { %159 = vmatpush3.bf16.msra.mxu0 %v168_v6  ;;  %v142_v16 = vld [vmem:[%s223_s1] ss:$0 sm:$0xff] }
   0x4   :  { %v24_v4 = vsel %vm23_vm0, %v21_v2, 0.0  ;;  %v27_v5 = vsel %vm23_vm0, %v22_v3, 0.0  ;;  %160 = vmatprep.subr.bf16.mxu0 %v175_v7 }
   0x5   :  { %25 = vadd.xlane.f32.xlu0 %v24_v4 }
   0x7   :  { %161 = vmatpush3.bf16.msra.mxu0 %v169_v8 }
   0x9   :  { %28 = vadd.xlane.f32.xlu0 %v27_v5 }
  0x8e   :  { %v26_v9 = vpop.xlane.xlu0 %25 }
  0x8f   :  { %v31_v10 = vmul.f32 0.03125, %v26_v9 }
  0x91   :  { %v33_v11 = vadd.f32 1e-05, %v31_v10 }
  0x92   :  { %v29_v12 = vpop.xlane.xlu0 %28 }
  0x93   :  { %171 = vrsqrt.f32 %v33_v11  ;;  %v32_v13 = vmul.f32 0.03125, %v29_v12 }
  0x95   :  { %v34_v14 = vadd.f32 1e-05, %v32_v13 }
  0x97   :  { %173 = vrsqrt.f32 %v34_v14 }
  0xa0   :  { %v172_v15 = vpop.eup %171 }
  0xa1   :  { %v37_v17 = vmul.f32 %v172_v15, %v19_v0 }
  0xa3   :  { %v46_v18 = vmul.f32 %v142_v16, %v37_v17 }
  0xa4   :  { %v174_v19 = vpop.eup %173 }
  0xa5   :  { %v151_v20 = vpack.c.bf16 %v46_v18, %v46_v18  ;;  %v38_v21 = vmul.f32 %v174_v19, %v20_v1 }
  0xa7   :  { %57 = vst.msk [vmem:[#allocation2] sm:$0xf] %vm56_vm2, %v151_v20  ;;  %v47_v22 = vmul.f32 %v142_v16, %v38_v21 }
  0xa9   :  { %v152_v23 = vpack.c.bf16 %v47_v22, %v47_v22 }
  0xab   :  { %58 = vst.msk [vmem:[#allocation2 + $0x4] sm:$0xf] %vm56_vm2, %v152_v23 }
  0xb2   :  { %v170_v24 = vld [vmem:[#allocation2] sm:$0xff]  }
  0xb3   :  { %163 = vmatmul.mubr.msk.bf16.vlgmr.msra.gmra.mxu0 %vm23_vm0, %v170_v24 }
 0x173   :  { %v120_v25 = vpop.f32.mrf.mxu0 }
 0x174   :  { %v153_v26 = vpack.c.bf16 %v120_v25, %v120_v25 }
 0x175   :  { %v164_v27 = vpop.f32.mrf.mxu0 }
 0x176   :  { %136 = vst.msk [vmem:[%s224_s3] sm:$0xf] %vm135_vm3, %v153_v26 }
 0x177   :  { %v123_v28 = vpop.f32.mrf.mxu0 }
 0x178   :  { %v154_v29 = vpack.c.bf16 %v123_v28, %v123_v28 }
 0x179   :  { %v165_v30 = vpop.f32.mrf.mxu0 }
 0x17a   :  { %137 = vst.msk [vmem:[%s224_s3 + $0x4] sm:$0xf] %vm135_vm3, %v154_v29 }

// kernel: xformer_lm_forward.16
= control target key start
LH: loop header
LB: loop body
LE: loop exit
PB: predicated region body
PF: predicated region fallthrough
CT: control target
= control target key end

     0   :  { %s813_s12 = smov 0   ;;  %s815_s13 = smov 0   ;;  %s869_s0 = inlined_call_operand.vmem [shape: bf16[8,8,8], index: 0, kind: input, shape index: {}]   ;;  %s870_s1 = inlined_call_operand.vmem [shape: bf16[8,8,8], index: 1, kind: input, shape index: {}]   ;;  %s871_s2 = inlined_call_operand.vmem [shape: bf16[8,8,8], index: 2, kind: input, shape index: {}]   ;;  %s872_s3 = inlined_call_operand.vmem [shape: bf16[8,8,8], index: 3, kind: output, shape index: {}]  }
   0x1   :  { %s817_s14 = smov 0  }
   0x2 LB: > { %s32_s15 = sadd.s32 1, %s783_s13  ;;  %p702_p0 = scmp.ge.s32.totalorder %s787_s14, 1  ;;  %s787_s14 = sphi %s817_s14, %s13_s14   ;;  %s783_s13 = sphi %s815_s13, %s874_s13   ;;  %s779_s12 = sphi %s813_s12, %s873_s12  }
   0x3   : > { %p34_p1 = scmp.ge.s32.totalorder %s32_s15, 8  ;;  %p206_p2 = scmp.lt.s32.totalorder %s787_s14, 9 }
   0x5   : > { %s876_s15 = smov (%p34_p1, %s32_s15), 0  ;;  %p207_p3 = pnand %p702_p0, %p206_p2 }
   0x6   : > { %p252_p4 = scmp.lt.s32.totalorder (!%p207_p3), %s779_s12, 7 }
   0x7   : > { %210 = sbr.rel (%p207_p3) target bundleno = 793 (0x319), region = 32 }
   0xc   : > { %vm296_vm0 = vcmask 64512   ;;  %v789_v0 = vmov 0.0   ;;  %vm790_vm1 = vmmov 0   ;;  %s878_s12 = smov (!%p252_p4, %s779_s12), 7  ;;  %vm293_vm2 = vcmask 7168  }
   0xd   : > { %717 = vmatprep.subr.bf16.mxu0 %v789_v0  ;;  %297 = vst.msk [vmem:[#allocation4] sm:$0xff] %vm296_vm0, %v789_v0  ;;  %719 = vmatprep.mubr.msk.bf16.mxu0 %vm790_vm1, %v789_v0  ;;  %s832_s16 = sshll.u32 %s878_s12, 2  ;;  %v791_v4 = vmov -inf   ;;  %v487_v5 = vlaneseq  ;;  %v792_v14 = vmov 0   ;;  %vm529_vm4 = vcmask 1043456  }
   0xe   : > { %723 = vmatprep.subr.bf16.mxu1 %v789_v0  ;;  %725 = vmatprep.mubr.msk.bf16.mxu1 %vm790_vm1, %v789_v0  ;;  %s267_s19 = scalar_lea.vmem %s870_s1, %s832_s16  ;;  %s258_s22 = scalar_lea.vmem %s869_s0, %s832_s16  ;;  %294 = vst.msk [vmem:[#allocation2] sm:$0xff] %vm293_vm2, %v791_v4  ;;  %295 = vst.msk [vmem:[#allocation3] sm:$0xff] %vm293_vm2, %v789_v0  ;;  %vm589_vm5 = vcmask 60416  }
   0xf   : > { %v439_v1 = vld [vmem:[%s267_s19] sm:$0xf]  ;;  %v488_v6 = vshrl.u32 %v487_v5, 7  ;;  %v490_v7 = vand.u32 127, %v487_v5  ;;  %757 = vset.pattern.permute.xlu0 %v792_v14  ;;  %758 = vset.pattern.permute.xlu1 %v792_v14  ;;  %s278_s25 = scalar_lea.vmem %s871_s2, %s832_s16  ;;  %s287_s28 = scalar_lea.vmem %s872_s3, %s832_s16 }
  0x10   : > { %v445_v2 = vsel %vm296_vm0, %v439_v1, 0  ;;  %v438_v3 = vld [vmem:[%s258_s22] sm:$0xf] }
  0x11   : > { %718 = vmatpush3.bf16.xpose.msra.mxu0 %v445_v2  ;;  %vm491_vm3 = vcmp.le.s32.totalorder %v490_v7, %v488_v6  ;;  %v525_v19 = vld [vmem:[%s278_s25] sm:$0xf] }
  0x12   : > { %v531_v20 = vsel %vm529_vm4, %v525_v19, 0 }
  0x13   : > { %724 = vmatpush3.bf16.msra.mxu1 %v531_v20 }
  0x14   : > { %v517_v35 = vld [vmem:[#allocation4] sm:$0xff] }
  0x15   : > { %v493_v15 = vld [vmem:[#allocation2] sm:$0xff]  ;;  %v509_v29 = vld [vmem:[#allocation3] sm:$0xff] }
  0x18   : > { %720 = vmatmul.mubr.msk.bf16.vlgmr.msra.gmra.mxu0 %vm296_vm0, %v438_v3 }
  0xd8   : > { %v481_v8 = vpop.f32.mrf.mxu0 }
  0xd9   : > { %v492_v9 = vsel %vm491_vm3, %v481_v8, -1e+30 }
  0xda   : > { %v721_v10 = vpop.f32.mrf.mxu0  ;;  %v494_v11 = vsel %vm296_vm0, %v492_v9, -inf }
  0xdb   : > { %495 = vmax.xlane.f32.xlu0 %v494_v11 }
  0xdc   : > { %v484_v12 = vpop.f32.mrf.mxu0 }
  0xde   : > { %v722_v13 = vpop.f32.mrf.mxu0 }
 0x164   : > { %v496_v16 = vpop.xlane.xlu0 %495 }
 0x165   : > { %v497_v17 = vmax.f32 %v493_v15, %v496_v16 }
 0x167   : > { %v498_v18 = vsub.f32 %v493_v15, %v497_v17  ;;  %575 = vst.msk [vmem:[#allocation2] sm:$0xff] %vm293_vm2, %v497_v17  ;;  %503 = vperm.xlu0 %757, %v497_v17  }
 0x169   : > { %v499_v25 = vmul.f32 1.442695, %v498_v18 }
 0x1e2   : > { %v504_v21 = vpop.permute.xlu0 %503 }
 0x1e3   : > { %v506_v22 = vsub.f32 %v492_v9, %v504_v21 }
 0x1e5   : > { %v507_v23 = vmul.f32 1.442695, %v506_v22 }
 0x1e7   : > { %759 = vpow2.f32 %v507_v23 }
 0x1e8   : > { %761 = vpow2.f32 %v499_v25 }
 0x1f4   : > { %v760_v24 = vpop.eup %759 }
 0x1f5   : > { %v511_v26 = vsel %vm296_vm0, %v760_v24, 0.0  ;;  %v524_v27 = vpack.c.bf16 %v760_v24, %v760_v24  ;;  %v762_v28 = vpop.eup %761 }
 0x1f6   : > { %512 = vadd.xlane.f32.xlu1 %v511_v26  ;;  %v510_v30 = vmul.f32 %v762_v28, %v509_v29 }
 0x1f7   : > { %726 = vmatmul.mubr.msk.bf16.vlgmr.msra.gmra.mxu1 %vm296_vm0, %v524_v27 }
 0x207   : > { %520 = vperm.xlu1 %758, %v762_v28  }
 0x27f   : > { %v513_v31 = vpop.xlane.xlu1 %512 }
 0x280   : > { %v514_v32 = vadd.f32 %v513_v31, %v510_v30 }
 0x282   : > { %516 = vst.msk [vmem:[#allocation3] sm:$0xff] %vm293_vm2, %v514_v32 }
 0x283   : > { %v521_v36 = vpop.permute.xlu1 %520 }
 0x284   : > { %v523_v37 = vmul.f32 %v521_v36, %v517_v35 }
 0x289   : > { %v580_v33 = vld [vmem:[#allocation3] sm:$0xff] }
 0x28a   : > { %763 = vrcp.f32 %v580_v33 }
 0x297   : > { %v764_v34 = vpop.eup %763 }
 0x298   : > { %584 = vperm.xlu1 %758, %v764_v34  }
 0x2b7   : > { %v567_v38 = vpop.f32.mrf.mxu1 }
 0x2b8   : > { %v573_v39 = vadd.f32 %v567_v38, %v523_v37 }
 0x2b9   : > { %v727_v40 = vpop.f32.mrf.mxu1 }
 0x2ba   : > { %574 = vst.msk [vmem:[#allocation4] sm:$0xff] %vm296_vm0, %v573_v39 }
 0x2bb   : > { %v570_v41 = vpop.f32.mrf.mxu1 }
 0x2bd   : > { %v728_v42 = vpop.f32.mrf.mxu1 }
 0x2c1   : > { %v579_v43 = vld [vmem:[#allocation4] sm:$0xff] }
 0x313   : > { %v585_v44 = vpop.permute.xlu1 %584 }
 0x314   : > { %v587_v45 = vmul.f32 %v585_v44, %v579_v43 }
 0x316   : > { %v588_v46 = vpack.c.bf16 %v587_v45, %v587_v45 }
 0x318   : > { %590 = vst.msk [vmem:[%s287_s28] sm:$0xf] %vm589_vm5, %v588_v46 }
 0x319 PF: > { %s13_s14 = sadd.s32 1, %s787_s14   ;;  %s873_s12 = smov %s783_s13 }
 0x31a   : > { %p10_p5 = scmp.ge.s32.totalorder %s13_s14, 10   ;;  %s874_s13 = smov %s876_s15 }
 0x31c   :  { %12 = sbr.rel (!%p10_p5) target bundleno = 2 (0x2), region = 84 }

// kernel: xformer_lm_forward.25
= control target key start
LH: loop header
LB: loop body
LE: loop exit
PB: predicated region body
PF: predicated region fallthrough
CT: control target
= control target key end

     0   :  { %vm24_vm0 = vcmask 261120   ;;  %s247_s0 = inlined_call_operand.vmem [shape: f32[16,32], index: 0, kind: input, shape index: {}]   ;;  %s248_s1 = inlined_call_operand.vmem [shape: f32[1,32], index: 1, kind: input, shape index: {}]   ;;  %s249_s2 = inlined_call_operand.vmem [shape: bf16[32,64], index: 2, kind: input, shape index: {}]   ;;  %s250_s3 = inlined_call_operand.hbm [shape: f32[16,64], index: 3, kind: output, shape index: {}]  }
   0x1   :  { %v20_v0 = vld [vmem:[%s247_s0] sm:$0xff]  ;;  %v21_v1 = vld [vmem:[%s247_s0 + $0x8] sm:$0xff] }
   0x2   :  { %v22_v2 = vmul.f32 %v20_v0, %v20_v0  ;;  %v23_v3 = vmul.f32 %v21_v1, %v21_v1 }
   0x3   :  { %8 = vsyncpa [#allocation4], 0  ;;  %v172_v6 = vld [vmem:[%s249_s2 + $0x8] sm:$0xff]   ;;  %v201_v7 = vmov 0.0   ;;  %vm202_vm1 = vmmov 0   ;;  %v173_v8 = vld [vmem:[%s249_s2] sm:$0xff]  }
   0x4   :  { %v25_v4 = vsel %vm24_vm0, %v22_v2, 0.0  ;;  %v28_v5 = vsel %vm24_vm0, %v23_v3, 0.0  ;;  %159 = vmatprep.subr.bf16.mxu0 %v201_v7  ;;  %163 = vmatprep.mubr.msk.bf16.mxu0 %vm202_vm1, %v201_v7  ;;  %v147_v16 = vld [vmem:[%s248_s1] ss:$0 sm:$0xff]  ;;  %vm57_vm2 = vcmask 257024   ;;  %vm128_vm3 = vcmask 523264  }
   0x5   :  { %26 = vadd.xlane.f32.xlu0 %v25_v4  ;;  %160 = vmatpush3.bf16.msra.mxu0 %v172_v6  ;;  %s203_s2 = smov [#allocation3]  }
   0x6   :  { %161 = vmatprep.subr.bf16.mxu0 %v201_v7  ;;  %s136_s21 = sshll.u32 %s203_s2, 4  ;;  %s137_s21 = int_to_ptr.vmem [resolvable:$true] %s136_s21 }
   0x7   :  { %s179_s1 = scalar_lea.vmem %s137_s21, 256  ;;  %p184_p1 = scmp.lt.s32.totalorder %s137_s21, %s137_s21 }
   0x8   :  { %p180_p0 = scmp.ne.s32.totalorder %s137_s21, %s179_s1  ;;  %p185_p2 = scmp.lt.s32.totalorder %s179_s1, %s179_s1 }
   0x9   :  { %29 = vadd.xlane.f32.xlu0 %v28_v5  ;;  %162 = vmatpush3.bf16.msra.mxu0 %v173_v8 }
   0xa   :  { %p186_p3 = por %p185_p2, %p184_p1 }
   0xc   :  { %p187_p4 = pnand %p186_p3, %p180_p0 }
  0x8e   :  { %v27_v9 = vpop.xlane.xlu0 %26 }
  0x8f   :  { %v32_v10 = vmul.f32 0.03125, %v27_v9 }
  0x91   :  { %v34_v11 = vadd.f32 1e-05, %v32_v10 }
  0x92   :  { %v30_v12 = vpop.xlane.xlu0 %29 }
  0x93   :  { %175 = vrsqrt.f32 %v34_v11  ;;  %v33_v13 = vmul.f32 0.03125, %v30_v12 }
  0x95   :  { %v35_v14 = vadd.f32 1e-05, %v33_v13 }
  0x97   :  { %177 = vrsqrt.f32 %v35_v14 }
  0xa0   :  { %v176_v15 = vpop.eup %175 }
  0xa1   :  { %v38_v17 = vmul.f32 %v176_v15, %v20_v0 }
  0xa3   :  { %v47_v18 = vmul.f32 %v147_v16, %v38_v17 }
  0xa4   :  { %v178_v19 = vpop.eup %177 }
  0xa5   :  { %v154_v20 = vpack.c.bf16 %v47_v18, %v47_v18  ;;  %v39_v21 = vmul.f32 %v178_v19, %v21_v1 }
  0xa7   :  { %58 = vst.msk [vmem:[#allocation2] sm:$0xf] %vm57_vm2, %v154_v20  ;;  %v48_v22 = vmul.f32 %v147_v16, %v39_v21 }
  0xa9   :  { %v155_v23 = vpack.c.bf16 %v48_v22, %v48_v22 }
  0xab   :  { %59 = vst.msk [vmem:[#allocation2 + $0x4] sm:$0xf] %vm57_vm2, %v155_v23 }
  0xb2   :  { %v174_v24 = vld [vmem:[#allocation2] sm:$0xff]  }
  0xb3   :  { %164 = vmatmul.mubr.msk.bf16.vlgmr.msra.gmra.mxu0 %vm24_vm0, %v174_v24 }
 0x173   :  { %v121_v25 = vpop.f32.mrf.mxu0 }
 0x174   :  { %129 = vst.msk [vmem:[#allocation3] sm:$0xff] %vm128_vm3, %v121_v25 }
 0x175   :  { %v165_v26 = vpop.f32.mrf.mxu0 }
 0x177   :  { %v124_v27 = vpop.f32.mrf.mxu0 }
 0x178   :  { %130 = vst.msk [vmem:[#allocation3 + $0x8] sm:$0xff] %vm128_vm3, %v124_v27 }
 0x179   :  { %v166_v28 = vpop.f32.mrf.mxu0 }
 0x17a   :  { %190 = shalt.err (!%p187_p4)
}
 0x17b   :  { %s204_s22 = smov 128   ;;  %s205_s23 = smov 8  }
 0x17c   :  { %142 = dma.vmem_to_hbm [thread:$0]  %s137_s21, 256, %s250_s3, [#allocation4], %s204_s22, %s204_s22, %s205_s23  }
 0x17d   :  { %199 = dma.done.wait [#allocation4], 256  }
 0x17e   :  { %200 = vsyncadd [#allocation4], 4294967040 }
 0x17f   :  { %146 = vsyncpa [#allocation4], 1 }

// kernel: xformer_lm_forward.18
= control target key start
LH: loop header
LB: loop body
LE: loop exit
PB: predicated region body
PF: predicated region fallthrough
CT: control target
= control target key end

     0   :  { %vm29_vm0 = vcmask 261120   ;;  %v384_v7 = vmov 0.0   ;;  %vm385_vm1 = vmmov 0   ;;  %vm62_vm2 = vcmask 257024   ;;  %s468_s0 = inlined_call_operand.vmem [shape: f32[16,32], index: 0, kind: input, shape index: {}]   ;;  %s469_s2 = inlined_call_operand.vmem [shape: bf16[32,64], index: 2, kind: input, shape index: {}]   ;;  %s470_s3 = inlined_call_operand.vmem [shape: bf16[32,64], index: 3, kind: input, shape index: {}]   ;;  %s471_s1 = inlined_call_operand.vmem [shape: f32[1,32], index: 1, kind: input, shape index: {}]   ;;  %s472_s4 = inlined_call_operand.vmem [shape: bf16[64,32], index: 4, kind: input, shape index: {}]   ;;  %s473_s5 = inlined_call_operand.vmem [shape: f32[16,32], index: 5, kind: output, shape index: {}]  }
   0x1   :  { %v25_v0 = vld [vmem:[%s468_s0] sm:$0xff]  ;;  %v26_v1 = vld [vmem:[%s468_s0 + $0x8] sm:$0xff]  ;;  %333 = vmatprep.subr.bf16.mxu1 %v384_v7  ;;  %349 = vmatprep.subr.bf16.mxu0 %v384_v7  ;;  %v368_v27 = vld [vmem:[%s472_s4 + $0x18] sm:$0xff]   ;;  %vm243_vm3 = vcmask 523264  }
   0x2   :  { %v27_v2 = vmul.f32 %v25_v0, %v25_v0  ;;  %65 = vst.msk [vmem:[#allocation3] sm:$0xff] %vm29_vm0, %v25_v0  ;;  %v28_v3 = vmul.f32 %v26_v1, %v26_v1  ;;  %66 = vst.msk [vmem:[#allocation3 + $0x8] sm:$0xff] %vm29_vm0, %v26_v1  ;;  %v363_v6 = vld [vmem:[%s469_s2 + $0x8] sm:$0xff]   ;;  %v364_v8 = vld [vmem:[%s469_s2] sm:$0xff]   ;;  %337 = vmatprep.mubr.msk.bf16.mxu1 %vm385_vm1, %v384_v7  ;;  %357 = vmatprep.mubr.msk.bf16.mxu0 %vm385_vm1, %v384_v7 }
   0x3   :  { %334 = vmatpush3.bf16.msra.mxu1 %v363_v6  ;;  %v303_v16 = vld [vmem:[%s471_s1] ss:$0 sm:$0xff]  ;;  %v366_v24 = vld [vmem:[%s470_s3 + $0x8] sm:$0xff]   ;;  %350 = vmatpush3.bf16.msra.mxu0 %v368_v27  ;;  %v369_v28 = vld [vmem:[%s472_s4 + $0x10] sm:$0xff]  }
   0x4   :  { %v30_v4 = vsel %vm29_vm0, %v27_v2, 0.0  ;;  %v33_v5 = vsel %vm29_vm0, %v28_v3, 0.0  ;;  %335 = vmatprep.subr.bf16.mxu1 %v384_v7  ;;  %v367_v26 = vld [vmem:[%s470_s3] sm:$0xff]   ;;  %351 = vmatprep.subr.bf16.mxu0 %v384_v7  ;;  %v370_v29 = vld [vmem:[%s472_s4 + $0x8] sm:$0xff]  }
   0x5   :  { %31 = vadd.xlane.f32.xlu0 %v30_v4  ;;  %v371_v30 = vld [vmem:[%s472_s4] sm:$0xff]  }
   0x7   :  { %336 = vmatpush3.bf16.msra.mxu1 %v364_v8  ;;  %352 = vmatpush3.bf16.msra.mxu0 %v369_v28 }
   0x8   :  { %341 = vmatprep.subr.bf16.mxu1 %v384_v7  ;;  %353 = vmatprep.subr.bf16.mxu0 %v384_v7 }
   0x9   :  { %34 = vadd.xlane.f32.xlu0 %v33_v5  ;;  %v209_v52 = vld [vmem:[#allocation3] sm:$0xff]  ;;  %v210_v56 = vld [vmem:[#allocation3 + $0x8] sm:$0xff] }
   0xb   :  { %354 = vmatpush3.bf16.msra.mxu0 %v370_v29 }
   0xc   :  { %355 = vmatprep.subr.bf16.mxu0 %v384_v7 }
   0xf   :  { %356 = vmatpush3.bf16.msra.mxu0 %v371_v30 }
  0x8e   :  { %v32_v9 = vpop.xlane.xlu0 %31 }
  0x8f   :  { %v37_v10 = vmul.f32 0.03125, %v32_v9 }
  0x91   :  { %v39_v11 = vadd.f32 1e-05, %v37_v10 }
  0x92   :  { %v35_v12 = vpop.xlane.xlu0 %34 }
  0x93   :  { %372 = vrsqrt.f32 %v39_v11  ;;  %v38_v13 = vmul.f32 0.03125, %v35_v12 }
  0x95   :  { %v40_v14 = vadd.f32 1e-05, %v38_v13 }
  0x97   :  { %374 = vrsqrt.f32 %v40_v14 }
  0xa0   :  { %v373_v15 = vpop.eup %372 }
  0xa1   :  { %v43_v17 = vmul.f32 %v373_v15, %v25_v0 }
  0xa3   :  { %v52_v18 = vmul.f32 %v303_v16, %v43_v17 }
  0xa4   :  { %v375_v19 = vpop.eup %374 }
  0xa5   :  { %v320_v20 = vpack.c.bf16 %v52_v18, %v52_v18  ;;  %v44_v21 = vmul.f32 %v375_v19, %v26_v1 }
  0xa7   :  { %63 = vst.msk [vmem:[#allocation2] sm:$0xf] %vm62_vm2, %v320_v20  ;;  %v53_v22 = vmul.f32 %v303_v16, %v44_v21 }
  0xa9   :  { %v321_v23 = vpack.c.bf16 %v53_v22, %v53_v22 }
  0xab   :  { %64 = vst.msk [vmem:[#allocation2 + $0x4] sm:$0xf] %vm62_vm2, %v321_v23 }
  0xb2   :  { %v365_v25 = vld [vmem:[#allocation2] sm:$0xff]  }
  0xb3   :  { %338 = vmatmul.mubr.msk.bf16.vlgmr.msra.gmra.mxu1 %vm29_vm0, %v365_v25 }
  0xb4   :  { %342 = vmatpush3.bf16.msra.mxu1 %v366_v24  ;;  %345 = vmatprep.mubr.msk.bf16.mxu1 %vm385_vm1, %v384_v7 }
  0xb5   :  { %343 = vmatprep.subr.bf16.mxu1 %v384_v7 }
  0xb8   :  { %344 = vmatpush3.bf16.msra.mxu1 %v367_v26 }
  0xbb   :  { %346 = vmatmul.mubr.msk.bf16.vlgmr.msra.gmra.mxu1 %vm29_vm0, %v365_v25 }
 0x173   :  { %v128_v31 = vpop.f32.mrf.mxu1 }
 0x174   :  { %v313_v32 = vmul.f32 -1.442695, %v128_v31 }
 0x175   :  { %v339_v33 = vpop.f32.mrf.mxu1 }
 0x176   :  { %376 = vpow2.f32 %v313_v32 }
 0x177   :  { %v131_v34 = vpop.f32.mrf.mxu1 }
 0x178   :  { %v314_v35 = vmul.f32 -1.442695, %v131_v34 }
 0x179   :  { %v340_v36 = vpop.f32.mrf.mxu1 }
 0x17a   :  { %378 = vpow2.f32 %v314_v35 }
 0x17b   :  { %v185_v37 = vpop.f32.mrf.mxu1 }
 0x17d   :  { %v347_v38 = vpop.f32.mrf.mxu1 }
 0x17f   :  { %v188_v39 = vpop.f32.mrf.mxu1 }
 0x181   :  { %v348_v40 = vpop.f32.mrf.mxu1 }
 0x183   :  { %v377_v41 = vpop.eup %376 }
 0x184   :  { %v198_v42 = vadd.f32 1.0, %v377_v41 }
 0x186   :  { %380 = vrcp.f32 %v198_v42 }
 0x187   :  { %v379_v43 = vpop.eup %378 }
 0x188   :  { %v199_v44 = vadd.f32 1.0, %v379_v43 }
 0x18a   :  { %382 = vrcp.f32 %v199_v44 }
 0x193   :  { %v381_v45 = vpop.eup %380 }
 0x194   :  { %v204_v46 = vmul.f32 %v381_v45, %v128_v31 }
 0x196   :  { %v206_v49 = vmul.f32 %v204_v46, %v185_v37 }
 0x197   :  { %v383_v47 = vpop.eup %382 }
 0x198   :  { %v205_v48 = vmul.f32 %v383_v47, %v131_v34 }
 0x19a   :  { %v207_v50 = vmul.f32 %v205_v48, %v188_v39 }
 0x19c   :  { %v208_v51 = vpack.c.bf16 %v207_v50, %v206_v49 }
 0x19e   :  { %358 = vmatmul.mubr.msk.bf16.vlgmr.msra.gmra.mxu0 %vm243_vm3, %v208_v51 }
 0x25e   :  { %v281_v53 = vpop.f32.mrf.mxu0 }
 0x25f   :  { %v288_v54 = vadd.f32 %v281_v53, %v209_v52 }
 0x260   :  { %v359_v55 = vpop.f32.mrf.mxu0 }
 0x261   :  { %290 = vst.msk [vmem:[#allocation3] sm:$0xff] %vm29_vm0, %v288_v54 }
 0x262   :  { %v284_v57 = vpop.f32.mrf.mxu0 }
 0x263   :  { %v289_v58 = vadd.f32 %v284_v57, %v210_v56 }
 0x264   :  { %v360_v59 = vpop.f32.mrf.mxu0 }
 0x265   :  { %291 = vst.msk [vmem:[#allocation3 + $0x8] sm:$0xff] %vm29_vm0, %v289_v58 }
 0x268   :  { %v295_v60 = vld [vmem:[#allocation3] sm:$0xff] }
 0x269   :  { %297 = vst.msk [vmem:[%s473_s5] sm:$0xff] %vm29_vm0, %v295_v60 }
 0x26c   :  { %v296_v61 = vld [vmem:[#allocation3 + $0x8] sm:$0xff] }
 0x26d   :  { %298 = vst.msk [vmem:[%s473_s5 + $0x8] sm:$0xff] %vm29_vm0, %v296_v61 }

</bundles_post_ra>
